<compile_context>
chip_gen: v7x
topology: tpu7x:2x2x1
jax: 0.10.0
libtpu: 0.0.40
codegen_flags: <defaults>
</compile_context>

<pallas_src>
import functools
import math

import jax
import jax.numpy as jnp
from jax.experimental import pallas as pl
from jax.experimental.pallas import tpu as pltpu


def _gelu_tanh(x):
    # Matches the module's gelu(): 0.5*x*(1+tanh(sqrt(2/pi)*(x+0.044715*x^3)))
    return 0.5 * x * (1.0 + jnp.tanh(math.sqrt(2.0 / math.pi) * (x + 0.044715 * x * x * x)))


def _layer_norm(x, w, b, eps):
    mean = jnp.mean(x, axis=-1, keepdims=True)
    var = jnp.mean((x - mean) * (x - mean), axis=-1, keepdims=True)
    return (x - mean) * jax.lax.rsqrt(var + eps) * w + b


def _encoder_layer_kernel(
    x_ref,
    qw_ref, qb_ref, kw_ref, kb_ref, vw_ref, vb_ref, ow_ref, ob_ref,
    lnw_ref, lnb_ref,
    w1_ref, b1_ref, w2_ref, b2_ref,
    flnw_ref, flnb_ref,
    o_ref,
    *, num_heads, eps,
):
    Bt, S, D = x_ref.shape
    dh = D // num_heads
    inv_scale = 1.0 / (dh ** 0.5)

    # Flatten the batch tile to (Bt*S, D) rows for all dense matmuls
    # (leading-dim merge only: lane dim is untouched).
    x3 = x_ref[...].astype(jnp.float32)         # (Bt, S, D)
    xf = x3.reshape(Bt * S, D)                  # (Bt*S, D)

    # Hoist weight / bias loads once.
    qw, kw, vw, ow = qw_ref[...], kw_ref[...], vw_ref[...], ow_ref[...]
    qb, kb, vb, ob = qb_ref[...], kb_ref[...], vb_ref[...], ob_ref[...]

    # --- attention projections (weights already (in, out): no transpose) ---
    # 1/sqrt(dh) folded into q (scalar factor commutes with the score matmul).
    q = (jnp.dot(xf, qw, preferred_element_type=jnp.float32) + qb) * inv_scale
    k = jnp.dot(xf, kw, preferred_element_type=jnp.float32) + kb
    v = jnp.dot(xf, vw, preferred_element_type=jnp.float32) + vb

    q3 = q.reshape(Bt, S, D)
    k3 = k.reshape(Bt, S, D)
    v3 = v.reshape(Bt, S, D)

    # --- attention, batched over the Bt dim per head.
    # Each head's (Bt*S, dh) output is multiplied by the matching dh rows of
    # the output projection and accumulated, so no lane-dim concat is needed.
    attn_f = jnp.zeros((Bt * S, D), jnp.float32)
    for h in range(num_heads):
        lo = h * dh
        qh = q3[:, :, lo:lo + dh]               # (Bt, S, dh)
        kh = k3[:, :, lo:lo + dh]
        vh = v3[:, :, lo:lo + dh]
        s = jnp.einsum("bqd,bkd->bqk", qh, kh,
                       preferred_element_type=jnp.float32)          # (Bt, S, S)
        s = s - jnp.max(s, axis=-1, keepdims=True)
        p = jnp.exp(s)
        inv_denom = pl.reciprocal(jnp.sum(p, axis=-1, keepdims=True), approx=True)
        oh = jnp.einsum("bqk,bkd->bqd", p, vh,
                        preferred_element_type=jnp.float32) * inv_denom  # (Bt, S, dh)
        attn_f = attn_f + jnp.dot(oh.reshape(Bt * S, dh), ow[lo:lo + dh, :],
                                  preferred_element_type=jnp.float32)
    attn_f = attn_f + ob

    # --- residual + layernorm ---
    y = _layer_norm(xf + attn_f, lnw_ref[...], lnb_ref[...], eps)

    # --- feed-forward (tanh-gelu) + residual + final layernorm ---
    h1 = jnp.dot(y, w1_ref[...], preferred_element_type=jnp.float32) + b1_ref[...]
    h1 = _gelu_tanh(h1)
    h2 = jnp.dot(h1, w2_ref[...], preferred_element_type=jnp.float32) + b2_ref[...]
    out = _layer_norm(y + h2, flnw_ref[...], flnb_ref[...], eps)

    o_ref[...] = out.reshape(Bt, S, D).astype(o_ref.dtype)


def _pick_batch_tile(B, S, target_rows=256):
    """Smallest divisor Bt of B with Bt*S >= target_rows (else all of B)."""
    for d in range(1, B + 1):
        if B % d == 0 and d * S >= target_rows:
            return d
    return B


def encoder_layer_pallas(x, params, *, num_heads, eps=1e-5, batch_tile=None):
    B, S, D = x.shape
    I = params["ff_w1"].shape[1]                # ff_w1 is (D, I)  (pre-transposed)
    Bt = batch_tile if batch_tile is not None else _pick_batch_tile(B, S)
    assert B % Bt == 0

    kernel = functools.partial(_encoder_layer_kernel, num_heads=num_heads, eps=eps)

    def full(shape):
        # Constant index_map: the weight tile never changes across grid steps.
        return pl.BlockSpec(shape, lambda b: tuple(0 for _ in shape))

    in_specs = [
        pl.BlockSpec((Bt, S, D), lambda b: (b, 0, 0)),   # x batch tile
        full((D, D)), full((1, D)),                      # q_proj W (in,out), b
        full((D, D)), full((1, D)),                      # k_proj W, b
        full((D, D)), full((1, D)),                      # v_proj W, b
        full((D, D)), full((1, D)),                      # out_proj W, b
        full((1, D)), full((1, D)),                      # layer_norm w, b
        full((D, I)), full((1, I)),                      # ff intermediate W (in,out), b
        full((I, D)), full((1, D)),                      # ff output W (in,out), b
        full((1, D)), full((1, D)),                      # final_layer_norm w, b
    ]

    out = pl.pallas_call(
        kernel,
        out_shape=jax.ShapeDtypeStruct((B, S, D), x.dtype),
        grid_spec=pltpu.PrefetchScalarGridSpec(
            num_scalar_prefetch=0,
            grid=(B // Bt,),
            in_specs=in_specs,
            out_specs=pl.BlockSpec((Bt, S, D), lambda b: (b, 0, 0)),
        ),
        compiler_params=pltpu.CompilerParams(
            dimension_semantics=("parallel",),
            vmem_limit_bytes=64 * 1024 * 1024,
        ),
    )(
        x,
        params["q_w"], params["q_b"],
        params["k_w"], params["k_b"],
        params["v_w"], params["v_b"],
        params["o_w"], params["o_b"],
        params["ln_w"], params["ln_b"],
        params["ff_w1"], params["ff_b1"],
        params["ff_w2"], params["ff_b2"],
        params["fln_w"], params["fln_b"],
    )
    return out


def encoder_layer_ref(x, params, *, num_heads, eps=1e-5):
    """Pure-JAX reference mirroring the PyTorch forward (dropout = identity).

    Weights use the pre-transposed (in, out) layout, i.e. y = x @ W + b.
    """
    B, S, D = x.shape
    dh = D // num_heads

    def linear(t, w, b):
        return jnp.einsum("bsd,de->bse", t, w) + b[0]

    q = linear(x, params["q_w"], params["q_b"])
    k = linear(x, params["k_w"], params["k_b"])
    v = linear(x, params["v_w"], params["v_b"])

    def split(t):
        return t.reshape(B, S, num_heads, dh).transpose(0, 2, 1, 3)  # (B,H,S,dh)

    qh, kh, vh = split(q), split(k), split(v)
    scores = jnp.einsum("bhqd,bhkd->bhqk", qh, kh) / (dh ** 0.5)
    probs = jax.nn.softmax(scores, axis=-1)
    attn = jnp.einsum("bhqk,bhkd->bhqd", probs, vh)
    attn = attn.transpose(0, 2, 1, 3).reshape(B, S, D)
    attn = linear(attn, params["o_w"], params["o_b"])

    def ln(t, w, b):
        m = jnp.mean(t, axis=-1, keepdims=True)
        var = jnp.mean((t - m) ** 2, axis=-1, keepdims=True)
        return (t - m) / jnp.sqrt(var + eps) * w[0] + b[0]

    y = ln(x + attn, params["ln_w"], params["ln_b"])
    h1 = _gelu_tanh(linear(y, params["ff_w1"], params["ff_b1"]))
    h2 = linear(h1, params["ff_w2"], params["ff_b2"])
    return ln(y + h2, params["fln_w"], params["fln_b"])


def make_params(key, dim, intermediate):
    """Parameters in kernel layout: weights are (in, out) — i.e. torch Linear
    weights transposed once at parameter-prep time. Kept f32 here for a tight
    correctness check; bf16 weights also work (matmuls accumulate in f32)."""
    keys = jax.random.split(key, 12)
    s = 0.05
    return {
        "q_w": jax.random.normal(keys[0], (dim, dim), jnp.float32) * s,
        "q_b": jax.random.normal(keys[1], (1, dim), jnp.float32) * s,
        "k_w": jax.random.normal(keys[2], (dim, dim), jnp.float32) * s,
        "k_b": jax.random.normal(keys[3], (1, dim), jnp.float32) * s,
        "v_w": jax.random.normal(keys[4], (dim, dim), jnp.float32) * s,
        "v_b": jax.random.normal(keys[5], (1, dim), jnp.float32) * s,
        "o_w": jax.random.normal(keys[6], (dim, dim), jnp.float32) * s,
        "o_b": jax.random.normal(keys[7], (1, dim), jnp.float32) * s,
        "ln_w": jnp.ones((1, dim), jnp.float32),
        "ln_b": jnp.zeros((1, dim), jnp.float32),
        "ff_w1": jax.random.normal(keys[8], (dim, intermediate), jnp.float32) * s,
        "ff_b1": jax.random.normal(keys[9], (1, intermediate), jnp.float32) * s,
        "ff_w2": jax.random.normal(keys[10], (intermediate, dim), jnp.float32) * s,
        "ff_b2": jax.random.normal(keys[11], (1, dim), jnp.float32) * s,
        "fln_w": jnp.ones((1, dim), jnp.float32),
        "fln_b": jnp.zeros((1, dim), jnp.float32),
    }


if __name__ == "__main__":
    # Small config consistent with the module: dimension=32, heads=4, intermediate=64
    B, S, D, H, I = 2, 8, 32, 4, 64
    key = jax.random.PRNGKey(0)
    kx, kp = jax.random.split(key)
    x = jax.random.normal(kx, (B, S, D), jnp.float32)
    params = make_params(kp, D, I)

    out = encoder_layer_pallas(x, params, num_heads=H)
    out = jax.block_until_ready(out)

    ref = encoder_layer_ref(x, params, num_heads=H)
    assert out.shape == (B, S, D)
    # Tolerance accounts for the approximate (EUP) softmax reciprocal.
    assert jnp.allclose(out, ref, atol=5e-3, rtol=5e-3), "mismatch vs pure-JAX reference"

    print("KERNEL_OK")
</pallas_src>

<mosaic_0001>
module attributes {stable_mosaic.version = 11 : i64} {
  func.func @_encoder_layer_kernel(%arg0: i32, %arg1: memref<2x8x32xf32, #tpu.memory_space<vmem>>, %arg2: memref<32x32xf32, #tpu.memory_space<vmem>>, %arg3: memref<1x32xf32, #tpu.memory_space<vmem>>, %arg4: memref<32x32xf32, #tpu.memory_space<vmem>>, %arg5: memref<1x32xf32, #tpu.memory_space<vmem>>, %arg6: memref<32x32xf32, #tpu.memory_space<vmem>>, %arg7: memref<1x32xf32, #tpu.memory_space<vmem>>, %arg8: memref<32x32xf32, #tpu.memory_space<vmem>>, %arg9: memref<1x32xf32, #tpu.memory_space<vmem>>, %arg10: memref<1x32xf32, #tpu.memory_space<vmem>>, %arg11: memref<1x32xf32, #tpu.memory_space<vmem>>, %arg12: memref<32x64xf32, #tpu.memory_space<vmem>>, %arg13: memref<1x64xf32, #tpu.memory_space<vmem>>, %arg14: memref<64x32xf32, #tpu.memory_space<vmem>>, %arg15: memref<1x32xf32, #tpu.memory_space<vmem>>, %arg16: memref<1x32xf32, #tpu.memory_space<vmem>>, %arg17: memref<1x32xf32, #tpu.memory_space<vmem>>, %arg18: memref<2x8x32xf32, #tpu.memory_space<vmem>>) attributes {dimension_semantics = [#tpu.dimension_semantics<parallel>], iteration_bounds = array<i64: 1>, scalar_prefetch = 0 : i64, scratch_operands = 0 : i64, tpu.core_type = #tpu.core_type<tc>, window_params = [{transform_indices = @transform_0, window_bounds = array<i64: 2, 8, 32>}, {pipeline_mode = #tpu.pipeline_mode<synchronous>, transform_indices = @transform_1, window_bounds = array<i64: 32, 32>}, {pipeline_mode = #tpu.pipeline_mode<synchronous>, transform_indices = @transform_2, window_bounds = array<i64: 1, 32>}, {pipeline_mode = #tpu.pipeline_mode<synchronous>, transform_indices = @transform_3, window_bounds = array<i64: 32, 32>}, {pipeline_mode = #tpu.pipeline_mode<synchronous>, transform_indices = @transform_4, window_bounds = array<i64: 1, 32>}, {pipeline_mode = #tpu.pipeline_mode<synchronous>, transform_indices = @transform_5, window_bounds = array<i64: 32, 32>}, {pipeline_mode = #tpu.pipeline_mode<synchronous>, transform_indices = @transform_6, window_bounds = array<i64: 1, 32>}, {pipeline_mode = #tpu.pipeline_mode<synchronous>, transform_indices = @transform_7, window_bounds = array<i64: 32, 32>}, {pipeline_mode = #tpu.pipeline_mode<synchronous>, transform_indices = @transform_8, window_bounds = array<i64: 1, 32>}, {pipeline_mode = #tpu.pipeline_mode<synchronous>, transform_indices = @transform_9, window_bounds = array<i64: 1, 32>}, {pipeline_mode = #tpu.pipeline_mode<synchronous>, transform_indices = @transform_10, window_bounds = array<i64: 1, 32>}, {pipeline_mode = #tpu.pipeline_mode<synchronous>, transform_indices = @transform_11, window_bounds = array<i64: 32, 64>}, {pipeline_mode = #tpu.pipeline_mode<synchronous>, transform_indices = @transform_12, window_bounds = array<i64: 1, 64>}, {pipeline_mode = #tpu.pipeline_mode<synchronous>, transform_indices = @transform_13, window_bounds = array<i64: 64, 32>}, {pipeline_mode = #tpu.pipeline_mode<synchronous>, transform_indices = @transform_14, window_bounds = array<i64: 1, 32>}, {pipeline_mode = #tpu.pipeline_mode<synchronous>, transform_indices = @transform_15, window_bounds = array<i64: 1, 32>}, {pipeline_mode = #tpu.pipeline_mode<synchronous>, transform_indices = @transform_16, window_bounds = array<i64: 1, 32>}, {transform_indices = @transform_17, window_bounds = array<i64: 2, 8, 32>}]} {
    %c0 = arith.constant 0 : index
    %c0_0 = arith.constant 0 : index
    %c0_1 = arith.constant 0 : index
    %0 = vector.load %arg1[%c0, %c0_0, %c0_1] : memref<2x8x32xf32, #tpu.memory_space<vmem>>, vector<2x8x32xf32>
    %1 = vector.shape_cast %0 : vector<2x8x32xf32> to vector<16x32xf32>
    %c0_2 = arith.constant 0 : index
    %c0_3 = arith.constant 0 : index
    %2 = vector.load %arg2[%c0_2, %c0_3] : memref<32x32xf32, #tpu.memory_space<vmem>>, vector<32x32xf32>
    %c0_4 = arith.constant 0 : index
    %c0_5 = arith.constant 0 : index
    %3 = vector.load %arg4[%c0_4, %c0_5] : memref<32x32xf32, #tpu.memory_space<vmem>>, vector<32x32xf32>
    %c0_6 = arith.constant 0 : index
    %c0_7 = arith.constant 0 : index
    %4 = vector.load %arg6[%c0_6, %c0_7] : memref<32x32xf32, #tpu.memory_space<vmem>>, vector<32x32xf32>
    %c0_8 = arith.constant 0 : index
    %c0_9 = arith.constant 0 : index
    %5 = vector.load %arg8[%c0_8, %c0_9] : memref<32x32xf32, #tpu.memory_space<vmem>>, vector<32x32xf32>
    %c0_10 = arith.constant 0 : index
    %c0_11 = arith.constant 0 : index
    %6 = vector.load %arg3[%c0_10, %c0_11] : memref<1x32xf32, #tpu.memory_space<vmem>>, vector<1x32xf32>
    %c0_12 = arith.constant 0 : index
    %c0_13 = arith.constant 0 : index
    %7 = vector.load %arg5[%c0_12, %c0_13] : memref<1x32xf32, #tpu.memory_space<vmem>>, vector<1x32xf32>
    %c0_14 = arith.constant 0 : index
    %c0_15 = arith.constant 0 : index
    %8 = vector.load %arg7[%c0_14, %c0_15] : memref<1x32xf32, #tpu.memory_space<vmem>>, vector<1x32xf32>
    %c0_16 = arith.constant 0 : index
    %c0_17 = arith.constant 0 : index
    %9 = vector.load %arg9[%c0_16, %c0_17] : memref<1x32xf32, #tpu.memory_space<vmem>>, vector<1x32xf32>
    %cst = arith.constant dense<0.000000e+00> : vector<16x32xf32>
    %10 = tpu.matmul %1, %2, %cst {dimension_numbers = #tpu.dot_dimension_numbers<[1], [0], [0], [1], [0, 0, 1, 1], [], []>} : vector<16x32xf32>, vector<32x32xf32>, vector<16x32xf32> -> vector<16x32xf32>
    %11 = vector.broadcast %6 : vector<1x32xf32> to vector<16x32xf32>
    %12 = arith.addf %10, %11 : vector<16x32xf32>
    %cst_18 = arith.constant 0.353553385 : f32
    %13 = vector.broadcast %cst_18 : f32 to vector<16x32xf32>
    %14 = arith.mulf %12, %13 : vector<16x32xf32>
    %cst_19 = arith.constant dense<0.000000e+00> : vector<16x32xf32>
    %15 = tpu.matmul %1, %3, %cst_19 {dimension_numbers = #tpu.dot_dimension_numbers<[1], [0], [0], [1], [0, 0, 1, 1], [], []>} : vector<16x32xf32>, vector<32x32xf32>, vector<16x32xf32> -> vector<16x32xf32>
    %16 = vector.broadcast %7 : vector<1x32xf32> to vector<16x32xf32>
    %17 = arith.addf %15, %16 : vector<16x32xf32>
    %cst_20 = arith.constant dense<0.000000e+00> : vector<16x32xf32>
    %18 = tpu.matmul %1, %4, %cst_20 {dimension_numbers = #tpu.dot_dimension_numbers<[1], [0], [0], [1], [0, 0, 1, 1], [], []>} : vector<16x32xf32>, vector<32x32xf32>, vector<16x32xf32> -> vector<16x32xf32>
    %19 = vector.broadcast %8 : vector<1x32xf32> to vector<16x32xf32>
    %20 = arith.addf %18, %19 : vector<16x32xf32>
    %21 = vector.shape_cast %14 : vector<16x32xf32> to vector<2x8x32xf32>
    %22 = vector.shape_cast %17 : vector<16x32xf32> to vector<2x8x32xf32>
    %23 = vector.shape_cast %20 : vector<16x32xf32> to vector<2x8x32xf32>
    %cst_21 = arith.constant 0.000000e+00 : f32
    %24 = vector.broadcast %cst_21 : f32 to vector<16x32xf32>
    %25 = vector.extract_strided_slice %21 {offsets = [0, 0, 0], sizes = [2, 8, 8], strides = [1, 1, 1]} : vector<2x8x32xf32> to vector<2x8x8xf32>
    %26 = vector.extract_strided_slice %22 {offsets = [0, 0, 0], sizes = [2, 8, 8], strides = [1, 1, 1]} : vector<2x8x32xf32> to vector<2x8x8xf32>
    %27 = vector.extract_strided_slice %23 {offsets = [0, 0, 0], sizes = [2, 8, 8], strides = [1, 1, 1]} : vector<2x8x32xf32> to vector<2x8x8xf32>
    "tpu.trace_start"() <{level = 10 : i32, message = "bqd,bkd->bqk"}> : () -> ()
    %cst_22 = arith.constant dense<0.000000e+00> : vector<2x8x8xf32>
    %28 = tpu.matmul %25, %26, %cst_22 {dimension_numbers = #tpu.dot_dimension_numbers<[2], [2], [1], [1], [0, 0, 0, 1, 1, 1], [0], [0]>} : vector<2x8x8xf32>, vector<2x8x8xf32>, vector<2x8x8xf32> -> vector<2x8x8xf32>
    "tpu.trace_stop"() : () -> ()
    %cst_23 = arith.constant dense<0xFF800000> : vector<2x8xf32>
    %29 = vector.multi_reduction <maximumf>, %28, %cst_23 [2] : vector<2x8x8xf32> to vector<2x8xf32>
    %30 = vector.shape_cast %29 : vector<2x8xf32> to vector<2x8x1xf32>
    %31 = vector.broadcast %30 : vector<2x8x1xf32> to vector<2x8x8xf32>
    %32 = arith.subf %28, %31 : vector<2x8x8xf32>
    %33 = math.exp %32 : vector<2x8x8xf32>
    %cst_24 = arith.constant dense<0.000000e+00> : vector<2x8xf32>
    %34 = vector.multi_reduction <add>, %33, %cst_24 [2] : vector<2x8x8xf32> to vector<2x8xf32>
    %35 = vector.shape_cast %34 : vector<2x8xf32> to vector<2x8x1xf32>
    %36 = tpu.reciprocal %35 {approx = true} : vector<2x8x1xf32> -> vector<2x8x1xf32>
    "tpu.trace_start"() <{level = 10 : i32, message = "bqk,bkd->bqd"}> : () -> ()
    %cst_25 = arith.constant dense<0.000000e+00> : vector<2x8x8xf32>
    %37 = tpu.matmul %33, %27, %cst_25 {dimension_numbers = #tpu.dot_dimension_numbers<[2], [1], [1], [2], [0, 0, 0, 1, 1, 2], [0], [0]>} : vector<2x8x8xf32>, vector<2x8x8xf32>, vector<2x8x8xf32> -> vector<2x8x8xf32>
    "tpu.trace_stop"() : () -> ()
    %38 = vector.broadcast %36 : vector<2x8x1xf32> to vector<2x8x8xf32>
    %39 = arith.mulf %37, %38 : vector<2x8x8xf32>
    %40 = vector.shape_cast %39 : vector<2x8x8xf32> to vector<16x8xf32>
    %41 = vector.extract_strided_slice %5 {offsets = [0, 0], sizes = [8, 32], strides = [1, 1]} : vector<32x32xf32> to vector<8x32xf32>
    %cst_26 = arith.constant dense<0.000000e+00> : vector<16x32xf32>
    %42 = tpu.matmul %40, %41, %cst_26 {dimension_numbers = #tpu.dot_dimension_numbers<[1], [0], [0], [1], [0, 0, 1, 1], [], []>} : vector<16x8xf32>, vector<8x32xf32>, vector<16x32xf32> -> vector<16x32xf32>
    %43 = arith.addf %24, %42 : vector<16x32xf32>
    %44 = vector.extract_strided_slice %21 {offsets = [0, 0, 8], sizes = [2, 8, 8], strides = [1, 1, 1]} : vector<2x8x32xf32> to vector<2x8x8xf32>
    %45 = vector.extract_strided_slice %22 {offsets = [0, 0, 8], sizes = [2, 8, 8], strides = [1, 1, 1]} : vector<2x8x32xf32> to vector<2x8x8xf32>
    %46 = vector.extract_strided_slice %23 {offsets = [0, 0, 8], sizes = [2, 8, 8], strides = [1, 1, 1]} : vector<2x8x32xf32> to vector<2x8x8xf32>
    "tpu.trace_start"() <{level = 10 : i32, message = "bqd,bkd->bqk"}> : () -> ()
    %cst_27 = arith.constant dense<0.000000e+00> : vector<2x8x8xf32>
    %47 = tpu.matmul %44, %45, %cst_27 {dimension_numbers = #tpu.dot_dimension_numbers<[2], [2], [1], [1], [0, 0, 0, 1, 1, 1], [0], [0]>} : vector<2x8x8xf32>, vector<2x8x8xf32>, vector<2x8x8xf32> -> vector<2x8x8xf32>
    "tpu.trace_stop"() : () -> ()
    %cst_28 = arith.constant dense<0xFF800000> : vector<2x8xf32>
    %48 = vector.multi_reduction <maximumf>, %47, %cst_28 [2] : vector<2x8x8xf32> to vector<2x8xf32>
    %49 = vector.shape_cast %48 : vector<2x8xf32> to vector<2x8x1xf32>
    %50 = vector.broadcast %49 : vector<2x8x1xf32> to vector<2x8x8xf32>
    %51 = arith.subf %47, %50 : vector<2x8x8xf32>
    %52 = math.exp %51 : vector<2x8x8xf32>
    %cst_29 = arith.constant dense<0.000000e+00> : vector<2x8xf32>
    %53 = vector.multi_reduction <add>, %52, %cst_29 [2] : vector<2x8x8xf32> to vector<2x8xf32>
    %54 = vector.shape_cast %53 : vector<2x8xf32> to vector<2x8x1xf32>
    %55 = tpu.reciprocal %54 {approx = true} : vector<2x8x1xf32> -> vector<2x8x1xf32>
    "tpu.trace_start"() <{level = 10 : i32, message = "bqk,bkd->bqd"}> : () -> ()
    %cst_30 = arith.constant dense<0.000000e+00> : vector<2x8x8xf32>
    %56 = tpu.matmul %52, %46, %cst_30 {dimension_numbers = #tpu.dot_dimension_numbers<[2], [1], [1], [2], [0, 0, 0, 1, 1, 2], [0], [0]>} : vector<2x8x8xf32>, vector<2x8x8xf32>, vector<2x8x8xf32> -> vector<2x8x8xf32>
    "tpu.trace_stop"() : () -> ()
    %57 = vector.broadcast %55 : vector<2x8x1xf32> to vector<2x8x8xf32>
    %58 = arith.mulf %56, %57 : vector<2x8x8xf32>
    %59 = vector.shape_cast %58 : vector<2x8x8xf32> to vector<16x8xf32>
    %60 = vector.extract_strided_slice %5 {offsets = [8, 0], sizes = [8, 32], strides = [1, 1]} : vector<32x32xf32> to vector<8x32xf32>
    %cst_31 = arith.constant dense<0.000000e+00> : vector<16x32xf32>
    %61 = tpu.matmul %59, %60, %cst_31 {dimension_numbers = #tpu.dot_dimension_numbers<[1], [0], [0], [1], [0, 0, 1, 1], [], []>} : vector<16x8xf32>, vector<8x32xf32>, vector<16x32xf32> -> vector<16x32xf32>
    %62 = arith.addf %43, %61 : vector<16x32xf32>
    %63 = vector.extract_strided_slice %21 {offsets = [0, 0, 16], sizes = [2, 8, 8], strides = [1, 1, 1]} : vector<2x8x32xf32> to vector<2x8x8xf32>
    %64 = vector.extract_strided_slice %22 {offsets = [0, 0, 16], sizes = [2, 8, 8], strides = [1, 1, 1]} : vector<2x8x32xf32> to vector<2x8x8xf32>
    %65 = vector.extract_strided_slice %23 {offsets = [0, 0, 16], sizes = [2, 8, 8], strides = [1, 1, 1]} : vector<2x8x32xf32> to vector<2x8x8xf32>
    "tpu.trace_start"() <{level = 10 : i32, message = "bqd,bkd->bqk"}> : () -> ()
    %cst_32 = arith.constant dense<0.000000e+00> : vector<2x8x8xf32>
    %66 = tpu.matmul %63, %64, %cst_32 {dimension_numbers = #tpu.dot_dimension_numbers<[2], [2], [1], [1], [0, 0, 0, 1, 1, 1], [0], [0]>} : vector<2x8x8xf32>, vector<2x8x8xf32>, vector<2x8x8xf32> -> vector<2x8x8xf32>
    "tpu.trace_stop"() : () -> ()
    %cst_33 = arith.constant dense<0xFF800000> : vector<2x8xf32>
    %67 = vector.multi_reduction <maximumf>, %66, %cst_33 [2] : vector<2x8x8xf32> to vector<2x8xf32>
    %68 = vector.shape_cast %67 : vector<2x8xf32> to vector<2x8x1xf32>
    %69 = vector.broadcast %68 : vector<2x8x1xf32> to vector<2x8x8xf32>
    %70 = arith.subf %66, %69 : vector<2x8x8xf32>
    %71 = math.exp %70 : vector<2x8x8xf32>
    %cst_34 = arith.constant dense<0.000000e+00> : vector<2x8xf32>
    %72 = vector.multi_reduction <add>, %71, %cst_34 [2] : vector<2x8x8xf32> to vector<2x8xf32>
    %73 = vector.shape_cast %72 : vector<2x8xf32> to vector<2x8x1xf32>
    %74 = tpu.reciprocal %73 {approx = true} : vector<2x8x1xf32> -> vector<2x8x1xf32>
    "tpu.trace_start"() <{level = 10 : i32, message = "bqk,bkd->bqd"}> : () -> ()
    %cst_35 = arith.constant dense<0.000000e+00> : vector<2x8x8xf32>
    %75 = tpu.matmul %71, %65, %cst_35 {dimension_numbers = #tpu.dot_dimension_numbers<[2], [1], [1], [2], [0, 0, 0, 1, 1, 2], [0], [0]>} : vector<2x8x8xf32>, vector<2x8x8xf32>, vector<2x8x8xf32> -> vector<2x8x8xf32>
    "tpu.trace_stop"() : () -> ()
    %76 = vector.broadcast %74 : vector<2x8x1xf32> to vector<2x8x8xf32>
    %77 = arith.mulf %75, %76 : vector<2x8x8xf32>
    %78 = vector.shape_cast %77 : vector<2x8x8xf32> to vector<16x8xf32>
    %79 = vector.extract_strided_slice %5 {offsets = [16, 0], sizes = [8, 32], strides = [1, 1]} : vector<32x32xf32> to vector<8x32xf32>
    %cst_36 = arith.constant dense<0.000000e+00> : vector<16x32xf32>
    %80 = tpu.matmul %78, %79, %cst_36 {dimension_numbers = #tpu.dot_dimension_numbers<[1], [0], [0], [1], [0, 0, 1, 1], [], []>} : vector<16x8xf32>, vector<8x32xf32>, vector<16x32xf32> -> vector<16x32xf32>
    %81 = arith.addf %62, %80 : vector<16x32xf32>
    %82 = vector.extract_strided_slice %21 {offsets = [0, 0, 24], sizes = [2, 8, 8], strides = [1, 1, 1]} : vector<2x8x32xf32> to vector<2x8x8xf32>
    %83 = vector.extract_strided_slice %22 {offsets = [0, 0, 24], sizes = [2, 8, 8], strides = [1, 1, 1]} : vector<2x8x32xf32> to vector<2x8x8xf32>
    %84 = vector.extract_strided_slice %23 {offsets = [0, 0, 24], sizes = [2, 8, 8], strides = [1, 1, 1]} : vector<2x8x32xf32> to vector<2x8x8xf32>
    "tpu.trace_start"() <{level = 10 : i32, message = "bqd,bkd->bqk"}> : () -> ()
    %cst_37 = arith.constant dense<0.000000e+00> : vector<2x8x8xf32>
    %85 = tpu.matmul %82, %83, %cst_37 {dimension_numbers = #tpu.dot_dimension_numbers<[2], [2], [1], [1], [0, 0, 0, 1, 1, 1], [0], [0]>} : vector<2x8x8xf32>, vector<2x8x8xf32>, vector<2x8x8xf32> -> vector<2x8x8xf32>
    "tpu.trace_stop"() : () -> ()
    %cst_38 = arith.constant dense<0xFF800000> : vector<2x8xf32>
    %86 = vector.multi_reduction <maximumf>, %85, %cst_38 [2] : vector<2x8x8xf32> to vector<2x8xf32>
    %87 = vector.shape_cast %86 : vector<2x8xf32> to vector<2x8x1xf32>
    %88 = vector.broadcast %87 : vector<2x8x1xf32> to vector<2x8x8xf32>
    %89 = arith.subf %85, %88 : vector<2x8x8xf32>
    %90 = math.exp %89 : vector<2x8x8xf32>
    %cst_39 = arith.constant dense<0.000000e+00> : vector<2x8xf32>
    %91 = vector.multi_reduction <add>, %90, %cst_39 [2] : vector<2x8x8xf32> to vector<2x8xf32>
    %92 = vector.shape_cast %91 : vector<2x8xf32> to vector<2x8x1xf32>
    %93 = tpu.reciprocal %92 {approx = true} : vector<2x8x1xf32> -> vector<2x8x1xf32>
    "tpu.trace_start"() <{level = 10 : i32, message = "bqk,bkd->bqd"}> : () -> ()
    %cst_40 = arith.constant dense<0.000000e+00> : vector<2x8x8xf32>
    %94 = tpu.matmul %90, %84, %cst_40 {dimension_numbers = #tpu.dot_dimension_numbers<[2], [1], [1], [2], [0, 0, 0, 1, 1, 2], [0], [0]>} : vector<2x8x8xf32>, vector<2x8x8xf32>, vector<2x8x8xf32> -> vector<2x8x8xf32>
    "tpu.trace_stop"() : () -> ()
    %95 = vector.broadcast %93 : vector<2x8x1xf32> to vector<2x8x8xf32>
    %96 = arith.mulf %94, %95 : vector<2x8x8xf32>
    %97 = vector.shape_cast %96 : vector<2x8x8xf32> to vector<16x8xf32>
    %98 = vector.extract_strided_slice %5 {offsets = [24, 0], sizes = [8, 32], strides = [1, 1]} : vector<32x32xf32> to vector<8x32xf32>
    %cst_41 = arith.constant dense<0.000000e+00> : vector<16x32xf32>
    %99 = tpu.matmul %97, %98, %cst_41 {dimension_numbers = #tpu.dot_dimension_numbers<[1], [0], [0], [1], [0, 0, 1, 1], [], []>} : vector<16x8xf32>, vector<8x32xf32>, vector<16x32xf32> -> vector<16x32xf32>
    %100 = arith.addf %81, %99 : vector<16x32xf32>
    %101 = vector.broadcast %9 : vector<1x32xf32> to vector<16x32xf32>
    %102 = arith.addf %100, %101 : vector<16x32xf32>
    %103 = arith.addf %1, %102 : vector<16x32xf32>
    %c0_42 = arith.constant 0 : index
    %c0_43 = arith.constant 0 : index
    %104 = vector.load %arg10[%c0_42, %c0_43] : memref<1x32xf32, #tpu.memory_space<vmem>>, vector<1x32xf32>
    %c0_44 = arith.constant 0 : index
    %c0_45 = arith.constant 0 : index
    %105 = vector.load %arg11[%c0_44, %c0_45] : memref<1x32xf32, #tpu.memory_space<vmem>>, vector<1x32xf32>
    %cst_46 = arith.constant dense<0.000000e+00> : vector<16xf32>
    %106 = vector.multi_reduction <add>, %103, %cst_46 [1] : vector<16x32xf32> to vector<16xf32>
    %107 = vector.shape_cast %106 : vector<16xf32> to vector<16x1xf32>
    %cst_47 = arith.constant 3.200000e+01 : f32
    %108 = vector.broadcast %cst_47 : f32 to vector<16x1xf32>
    %109 = arith.divf %107, %108 : vector<16x1xf32>
    %110 = vector.broadcast %109 : vector<16x1xf32> to vector<16x32xf32>
    %111 = arith.subf %103, %110 : vector<16x32xf32>
    %112 = vector.broadcast %109 : vector<16x1xf32> to vector<16x32xf32>
    %113 = arith.subf %103, %112 : vector<16x32xf32>
    %114 = arith.mulf %111, %113 : vector<16x32xf32>
    %cst_48 = arith.constant dense<0.000000e+00> : vector<16xf32>
    %115 = vector.multi_reduction <add>, %114, %cst_48 [1] : vector<16x32xf32> to vector<16xf32>
    %116 = vector.shape_cast %115 : vector<16xf32> to vector<16x1xf32>
    %cst_49 = arith.constant 3.200000e+01 : f32
    %117 = vector.broadcast %cst_49 : f32 to vector<16x1xf32>
    %118 = arith.divf %116, %117 : vector<16x1xf32>
    %119 = vector.broadcast %109 : vector<16x1xf32> to vector<16x32xf32>
    %120 = arith.subf %103, %119 : vector<16x32xf32>
    %cst_50 = arith.constant 9.99999974E-6 : f32
    %121 = vector.broadcast %cst_50 : f32 to vector<16x1xf32>
    %122 = arith.addf %118, %121 : vector<16x1xf32>
    %123 = math.rsqrt %122 : vector<16x1xf32>
    %124 = vector.broadcast %123 : vector<16x1xf32> to vector<16x32xf32>
    %125 = arith.mulf %120, %124 : vector<16x32xf32>
    %126 = vector.broadcast %104 : vector<1x32xf32> to vector<16x32xf32>
    %127 = arith.mulf %125, %126 : vector<16x32xf32>
    %128 = vector.broadcast %105 : vector<1x32xf32> to vector<16x32xf32>
    %129 = arith.addf %127, %128 : vector<16x32xf32>
    %c0_51 = arith.constant 0 : index
    %c0_52 = arith.constant 0 : index
    %130 = vector.load %arg12[%c0_51, %c0_52] : memref<32x64xf32, #tpu.memory_space<vmem>>, vector<32x64xf32>
    %cst_53 = arith.constant dense<0.000000e+00> : vector<16x64xf32>
    %131 = tpu.matmul %129, %130, %cst_53 {dimension_numbers = #tpu.dot_dimension_numbers<[1], [0], [0], [1], [0, 0, 1, 1], [], []>} : vector<16x32xf32>, vector<32x64xf32>, vector<16x64xf32> -> vector<16x64xf32>
    %c0_54 = arith.constant 0 : index
    %c0_55 = arith.constant 0 : index
    %132 = vector.load %arg13[%c0_54, %c0_55] : memref<1x64xf32, #tpu.memory_space<vmem>>, vector<1x64xf32>
    %133 = vector.broadcast %132 : vector<1x64xf32> to vector<16x64xf32>
    %134 = arith.addf %131, %133 : vector<16x64xf32>
    %cst_56 = arith.constant 5.000000e-01 : f32
    %135 = vector.broadcast %cst_56 : f32 to vector<16x64xf32>
    %136 = arith.mulf %135, %134 : vector<16x64xf32>
    %cst_57 = arith.constant 4.471500e-02 : f32
    %137 = vector.broadcast %cst_57 : f32 to vector<16x64xf32>
    %138 = arith.mulf %137, %134 : vector<16x64xf32>
    %139 = arith.mulf %138, %134 : vector<16x64xf32>
    %140 = arith.mulf %139, %134 : vector<16x64xf32>
    %141 = arith.addf %134, %140 : vector<16x64xf32>
    %cst_58 = arith.constant 0.797884583 : f32
    %142 = vector.broadcast %cst_58 : f32 to vector<16x64xf32>
    %143 = arith.mulf %142, %141 : vector<16x64xf32>
    %144 = math.tanh %143 : vector<16x64xf32>
    %cst_59 = arith.constant 1.000000e+00 : f32
    %145 = vector.broadcast %cst_59 : f32 to vector<16x64xf32>
    %146 = arith.addf %145, %144 : vector<16x64xf32>
    %147 = arith.mulf %136, %146 : vector<16x64xf32>
    %c0_60 = arith.constant 0 : index
    %c0_61 = arith.constant 0 : index
    %148 = vector.load %arg14[%c0_60, %c0_61] : memref<64x32xf32, #tpu.memory_space<vmem>>, vector<64x32xf32>
    %cst_62 = arith.constant dense<0.000000e+00> : vector<16x32xf32>
    %149 = tpu.matmul %147, %148, %cst_62 {dimension_numbers = #tpu.dot_dimension_numbers<[1], [0], [0], [1], [0, 0, 1, 1], [], []>} : vector<16x64xf32>, vector<64x32xf32>, vector<16x32xf32> -> vector<16x32xf32>
    %c0_63 = arith.constant 0 : index
    %c0_64 = arith.constant 0 : index
    %150 = vector.load %arg15[%c0_63, %c0_64] : memref<1x32xf32, #tpu.memory_space<vmem>>, vector<1x32xf32>
    %151 = vector.broadcast %150 : vector<1x32xf32> to vector<16x32xf32>
    %152 = arith.addf %149, %151 : vector<16x32xf32>
    %153 = arith.addf %129, %152 : vector<16x32xf32>
    %c0_65 = arith.constant 0 : index
    %c0_66 = arith.constant 0 : index
    %154 = vector.load %arg16[%c0_65, %c0_66] : memref<1x32xf32, #tpu.memory_space<vmem>>, vector<1x32xf32>
    %c0_67 = arith.constant 0 : index
    %c0_68 = arith.constant 0 : index
    %155 = vector.load %arg17[%c0_67, %c0_68] : memref<1x32xf32, #tpu.memory_space<vmem>>, vector<1x32xf32>
    %cst_69 = arith.constant dense<0.000000e+00> : vector<16xf32>
    %156 = vector.multi_reduction <add>, %153, %cst_69 [1] : vector<16x32xf32> to vector<16xf32>
    %157 = vector.shape_cast %156 : vector<16xf32> to vector<16x1xf32>
    %cst_70 = arith.constant 3.200000e+01 : f32
    %158 = vector.broadcast %cst_70 : f32 to vector<16x1xf32>
    %159 = arith.divf %157, %158 : vector<16x1xf32>
    %160 = vector.broadcast %159 : vector<16x1xf32> to vector<16x32xf32>
    %161 = arith.subf %153, %160 : vector<16x32xf32>
    %162 = vector.broadcast %159 : vector<16x1xf32> to vector<16x32xf32>
    %163 = arith.subf %153, %162 : vector<16x32xf32>
    %164 = arith.mulf %161, %163 : vector<16x32xf32>
    %cst_71 = arith.constant dense<0.000000e+00> : vector<16xf32>
    %165 = vector.multi_reduction <add>, %164, %cst_71 [1] : vector<16x32xf32> to vector<16xf32>
    %166 = vector.shape_cast %165 : vector<16xf32> to vector<16x1xf32>
    %cst_72 = arith.constant 3.200000e+01 : f32
    %167 = vector.broadcast %cst_72 : f32 to vector<16x1xf32>
    %168 = arith.divf %166, %167 : vector<16x1xf32>
    %169 = vector.broadcast %159 : vector<16x1xf32> to vector<16x32xf32>
    %170 = arith.subf %153, %169 : vector<16x32xf32>
    %cst_73 = arith.constant 9.99999974E-6 : f32
    %171 = vector.broadcast %cst_73 : f32 to vector<16x1xf32>
    %172 = arith.addf %168, %171 : vector<16x1xf32>
    %173 = math.rsqrt %172 : vector<16x1xf32>
    %174 = vector.broadcast %173 : vector<16x1xf32> to vector<16x32xf32>
    %175 = arith.mulf %170, %174 : vector<16x32xf32>
    %176 = vector.broadcast %154 : vector<1x32xf32> to vector<16x32xf32>
    %177 = arith.mulf %175, %176 : vector<16x32xf32>
    %178 = vector.broadcast %155 : vector<1x32xf32> to vector<16x32xf32>
    %179 = arith.addf %177, %178 : vector<16x32xf32>
    %180 = vector.shape_cast %179 : vector<16x32xf32> to vector<2x8x32xf32>
    %c0_74 = arith.constant 0 : index
    %c0_75 = arith.constant 0 : index
    %c0_76 = arith.constant 0 : index
    %181 = vector.load %arg18[%c0_74, %c0_75, %c0_76] : memref<2x8x32xf32, #tpu.memory_space<vmem>>, vector<2x8x32xf32>
    tpu.vector_store %arg18[%c0_74, %c0_75, %c0_76], %180 {strides = array<i32>} : memref<2x8x32xf32, #tpu.memory_space<vmem>>, vector<2x8x32xf32>,
    return
  }
  func.func @transform_0(%arg0: i32) -> (i32, i32, i32) {
    %c0_i32 = arith.constant 0 : i32
    %c0_i32_0 = arith.constant 0 : i32
    %c0_i32_1 = arith.constant 0 : i32
    return %arg0, %c0_i32, %c0_i32_0 : i32, i32, i32
  }
  func.func @transform_1(%arg0: i32) -> (i32, i32) {
    %c0_i32 = arith.constant 0 : i32
    %c0_i32_0 = arith.constant 0 : i32
    %c0_i32_1 = arith.constant 0 : i32
    return %c0_i32, %c0_i32_0 : i32, i32
  }
  func.func @transform_2(%arg0: i32) -> (i32, i32) {
    %c0_i32 = arith.constant 0 : i32
    %c0_i32_0 = arith.constant 0 : i32
    %c0_i32_1 = arith.constant 0 : i32
    return %c0_i32, %c0_i32_0 : i32, i32
  }
  func.func @transform_3(%arg0: i32) -> (i32, i32) {
    %c0_i32 = arith.constant 0 : i32
    %c0_i32_0 = arith.constant 0 : i32
    %c0_i32_1 = arith.constant 0 : i32
    return %c0_i32, %c0_i32_0 : i32, i32
  }
  func.func @transform_4(%arg0: i32) -> (i32, i32) {
    %c0_i32 = arith.constant 0 : i32
    %c0_i32_0 = arith.constant 0 : i32
    %c0_i32_1 = arith.constant 0 : i32
    return %c0_i32, %c0_i32_0 : i32, i32
  }
  func.func @transform_5(%arg0: i32) -> (i32, i32) {
    %c0_i32 = arith.constant 0 : i32
    %c0_i32_0 = arith.constant 0 : i32
    %c0_i32_1 = arith.constant 0 : i32
    return %c0_i32, %c0_i32_0 : i32, i32
  }
  func.func @transform_6(%arg0: i32) -> (i32, i32) {
    %c0_i32 = arith.constant 0 : i32
    %c0_i32_0 = arith.constant 0 : i32
    %c0_i32_1 = arith.constant 0 : i32
    return %c0_i32, %c0_i32_0 : i32, i32
  }
  func.func @transform_7(%arg0: i32) -> (i32, i32) {
    %c0_i32 = arith.constant 0 : i32
    %c0_i32_0 = arith.constant 0 : i32
    %c0_i32_1 = arith.constant 0 : i32
    return %c0_i32, %c0_i32_0 : i32, i32
  }
  func.func @transform_8(%arg0: i32) -> (i32, i32) {
    %c0_i32 = arith.constant 0 : i32
    %c0_i32_0 = arith.constant 0 : i32
    %c0_i32_1 = arith.constant 0 : i32
    return %c0_i32, %c0_i32_0 : i32, i32
  }
  func.func @transform_9(%arg0: i32) -> (i32, i32) {
    %c0_i32 = arith.constant 0 : i32
    %c0_i32_0 = arith.constant 0 : i32
    %c0_i32_1 = arith.constant 0 : i32
    return %c0_i32, %c0_i32_0 : i32, i32
  }
  func.func @transform_10(%arg0: i32) -> (i32, i32) {
    %c0_i32 = arith.constant 0 : i32
    %c0_i32_0 = arith.constant 0 : i32
    %c0_i32_1 = arith.constant 0 : i32
    return %c0_i32, %c0_i32_0 : i32, i32
  }
  func.func @transform_11(%arg0: i32) -> (i32, i32) {
    %c0_i32 = arith.constant 0 : i32
    %c0_i32_0 = arith.constant 0 : i32
    %c0_i32_1 = arith.constant 0 : i32
    return %c0_i32, %c0_i32_0 : i32, i32
  }
  func.func @transform_12(%arg0: i32) -> (i32, i32) {
    %c0_i32 = arith.constant 0 : i32
    %c0_i32_0 = arith.constant 0 : i32
    %c0_i32_1 = arith.constant 0 : i32
    return %c0_i32, %c0_i32_0 : i32, i32
  }
  func.func @transform_13(%arg0: i32) -> (i32, i32) {
    %c0_i32 = arith.constant 0 : i32
    %c0_i32_0 = arith.constant 0 : i32
    %c0_i32_1 = arith.constant 0 : i32
    return %c0_i32, %c0_i32_0 : i32, i32
  }
  func.func @transform_14(%arg0: i32) -> (i32, i32) {
    %c0_i32 = arith.constant 0 : i32
    %c0_i32_0 = arith.constant 0 : i32
    %c0_i32_1 = arith.constant 0 : i32
    return %c0_i32, %c0_i32_0 : i32, i32
  }
  func.func @transform_15(%arg0: i32) -> (i32, i32) {
    %c0_i32 = arith.constant 0 : i32
    %c0_i32_0 = arith.constant 0 : i32
    %c0_i32_1 = arith.constant 0 : i32
    return %c0_i32, %c0_i32_0 : i32, i32
  }
  func.func @transform_16(%arg0: i32) -> (i32, i32) {
    %c0_i32 = arith.constant 0 : i32
    %c0_i32_0 = arith.constant 0 : i32
    %c0_i32_1 = arith.constant 0 : i32
    return %c0_i32, %c0_i32_0 : i32, i32
  }
  func.func @transform_17(%arg0: i32) -> (i32, i32, i32) {
    %c0_i32 = arith.constant 0 : i32
    %c0_i32_0 = arith.constant 0 : i32
    %c0_i32_1 = arith.constant 0 : i32
    return %arg0, %c0_i32, %c0_i32_0 : i32, i32, i32
  }
}

</mosaic_0001>

<bundles_post_ra>
// kernel: tpu_custom_call.1
= control target key start
LH: loop header
LB: loop body
LE: loop exit
PB: predicated region body
PF: predicated region fallthrough
CT: control target
= control target key end

     0   :  { %s3911_s0 = inlined_call_operand.hbm [shape: f32[2,8,32], index: 0, kind: input, shape index: {}]   ;;  %s3912_s1 = inlined_call_operand.hbm [shape: f32[32,32], index: 1, kind: input, shape index: {}]   ;;  %s3913_s2 = inlined_call_operand.hbm [shape: f32[1,32], index: 2, kind: input, shape index: {}]   ;;  %s3914_s3 = inlined_call_operand.hbm [shape: f32[32,32], index: 3, kind: input, shape index: {}]   ;;  %s3915_s4 = inlined_call_operand.hbm [shape: f32[1,32], index: 4, kind: input, shape index: {}]   ;;  %s3916_s5 = inlined_call_operand.hbm [shape: f32[32,32], index: 5, kind: input, shape index: {}]   ;;  %s3917_s6 = inlined_call_operand.hbm [shape: f32[1,32], index: 6, kind: input, shape index: {}]   ;;  %s3918_s7 = inlined_call_operand.hbm [shape: f32[32,32], index: 7, kind: input, shape index: {}]   ;;  %s3919_s8 = inlined_call_operand.hbm [shape: f32[1,32], index: 8, kind: input, shape index: {}]   ;;  %s3920_s9 = inlined_call_operand.hbm [shape: f32[1,32], index: 9, kind: input, shape index: {}]   ;;  %s3921_s10 = inlined_call_operand.hbm [shape: f32[1,32], index: 10, kind: input, shape index: {}]   ;;  %s3922_s11 = inlined_call_operand.hbm [shape: f32[32,64], index: 11, kind: input, shape index: {}]   ;;  %s3923_s12 = inlined_call_operand.hbm [shape: f32[1,64], index: 12, kind: input, shape index: {}]   ;;  %s3924_s13 = inlined_call_operand.hbm [shape: f32[64,32], index: 13, kind: input, shape index: {}]   ;;  %s3925_s14 = inlined_call_operand.hbm [shape: f32[1,32], index: 14, kind: input, shape index: {}]   ;;  %s3926_s15 = inlined_call_operand.hbm [shape: f32[1,32], index: 15, kind: input, shape index: {}]   ;;  %s3927_s16 = inlined_call_operand.hbm [shape: f32[1,32], index: 16, kind: input, shape index: {}]   ;;  %s3928_s17 = inlined_call_operand.hbm [shape: f32[2,8,32], index: 17, kind: output, shape index: {}]  }
   0x1   :  { %3932 = sst [smem:[#allocation40_spill]] %s3911_s0 }
   0x2   :  { %3933 = sst [smem:[#allocation41_spill]] %s3912_s1 }
   0x3   :  { %3934 = sst [smem:[#allocation42_spill]] %s3928_s17 }
   0x4   :  { %22 = vsyncpa [#allocation3], 0 }
   0x5   :  { %23 = vsyncpa [#allocation6], 0 }
   0x6   :  { %24 = vsyncpa [#allocation9], 0 }
   0x7   :  { %25 = vsyncpa [#allocation12], 0 }
   0x8   :  { %26 = vsyncpa [#allocation15], 0 }
   0x9   :  { %27 = vsyncpa [#allocation18], 0 }
   0xa   :  { %28 = vsyncpa [#allocation21], 0 }
   0xb   :  { %29 = vsyncpa [#allocation24], 0 }
   0xc   :  { %30 = vsyncpa [#allocation27], 0 }
   0xd   :  { %31 = vsyncpa [#allocation4], 0  ;;  %s3349_s24 = smov [#allocation5]   ;;  %s3350_s26 = smov [#allocation8]  }
   0xe   :  { %s49_s25 = sshll.u32 %s3349_s24, 4  ;;  %s71_s27 = sshll.u32 %s3350_s26, 4  ;;  %s50_s25 = int_to_ptr.vmem [resolvable:$true] %s49_s25  ;;  %s3464_s27 = int_to_ptr.vmem [resolvable:$true] %s71_s27 }
   0xf   :  { %s3935_s0 = sld [smem:[#allocation41_spill]] }
  0x15   :  { %s2933_s30 = scalar_lea.hbm %s3935_s0, 512 }
  0x16   :  { %p2934_p0 = scmp.ne.s32.totalorder %s3935_s0, %s2933_s30  ;;  %p2937_p1 = scmp.lt.u32.totalorder %s2933_s30, %s3935_s0 }
  0x18   :  { %p2939_p2 = pnand %p2937_p1, %p2934_p0 }
  0x1a   :  { %2942 = shalt.err (!%p2939_p2)
}
  0x1b   :  { %s2943_s21 = scalar_lea.vmem %s50_s25, 512  ;;  %p2948_p4 = scmp.lt.s32.totalorder %s50_s25, %s50_s25 }
  0x1c   :  { %p2944_p3 = scmp.ne.s32.totalorder %s50_s25, %s2943_s21  ;;  %p2949_p5 = scmp.lt.s32.totalorder %s2943_s21, %s2943_s21 }
  0x1e   :  { %p2950_p6 = por %p2949_p5, %p2948_p4 }
  0x20   :  { %p2951_p7 = pnand %p2950_p6, %p2944_p3 }
  0x22   :  { %2954 = shalt.err (!%p2951_p7)
}
  0x23   :  { %s3351_s22 = smov 128   ;;  %s3352_s23 = smov 8  }
  0x24   :  { %55 = dma.hbm_to_vmem [thread:$0]  %s3935_s0, 512, %s50_s25, [#allocation6], %s3351_s22, %s3351_s22, %s3352_s23  }
  0x25   :  { %s2955_s30 = scalar_lea.hbm %s3914_s3, 512 }
  0x26   :  { %p2956_p8 = scmp.ne.s32.totalorder %s3914_s3, %s2955_s30  ;;  %p2959_p9 = scmp.lt.u32.totalorder %s2955_s30, %s3914_s3 }
  0x28   :  { %p2961_p10 = pnand %p2959_p9, %p2956_p8 }
  0x2a   :  { %2964 = shalt.err (!%p2961_p10)
}
  0x2b   :  { %s2965_s21 = scalar_lea.vmem %s3464_s27, 512  ;;  %p2970_p12 = scmp.lt.s32.totalorder %s3464_s27, %s3464_s27 }
  0x2c   :  { %p2966_p11 = scmp.ne.s32.totalorder %s3464_s27, %s2965_s21  ;;  %p2971_p13 = scmp.lt.s32.totalorder %s2965_s21, %s2965_s21 }
  0x2e   :  { %p2972_p0 = por %p2971_p13, %p2970_p12 }
  0x30   :  { %p2973_p1 = pnand %p2972_p0, %p2966_p11 }
  0x32   :  { %2976 = shalt.err (!%p2973_p1)
}
  0x33   :  { %77 = dma.hbm_to_vmem [thread:$0]  %s3914_s3, 512, %s3464_s27, [#allocation9], %s3351_s22, %s3351_s22, %s3352_s23  }
  0x34   :  { %s3353_s24 = smov [#allocation11]   ;;  %s3354_s28 = smov [#allocation14]  }
  0x35   :  { %s93_s26 = sshll.u32 %s3353_s24, 4  ;;  %s115_s29 = sshll.u32 %s3354_s28, 4  ;;  %s94_s26 = int_to_ptr.vmem [resolvable:$true] %s93_s26  ;;  %s3501_s29 = int_to_ptr.vmem [resolvable:$true] %s115_s29 }
  0x36   :  { %s2977_s19 = scalar_lea.hbm %s3916_s5, 512 }
  0x37   :  { %p2978_p2 = scmp.ne.s32.totalorder %s3916_s5, %s2977_s19  ;;  %p2981_p3 = scmp.lt.u32.totalorder %s2977_s19, %s3916_s5 }
  0x39   :  { %p2983_p4 = pnand %p2981_p3, %p2978_p2 }
  0x3b   :  { %2986 = shalt.err (!%p2983_p4)
}
  0x3c   :  { %s2987_s3 = scalar_lea.vmem %s94_s26, 512  ;;  %p2992_p6 = scmp.lt.s32.totalorder %s94_s26, %s94_s26 }
  0x3d   :  { %p2988_p5 = scmp.ne.s32.totalorder %s94_s26, %s2987_s3  ;;  %p2993_p7 = scmp.lt.s32.totalorder %s2987_s3, %s2987_s3 }
  0x3f   :  { %p2994_p8 = por %p2993_p7, %p2992_p6 }
  0x41   :  { %p2995_p9 = pnand %p2994_p8, %p2988_p5 }
  0x43   :  { %2998 = shalt.err (!%p2995_p9)
}
  0x44   :  { %99 = dma.hbm_to_vmem [thread:$0]  %s3916_s5, 512, %s94_s26, [#allocation12], %s3351_s22, %s3351_s22, %s3352_s23  }
  0x45   :  { %s2999_s17 = scalar_lea.hbm %s3918_s7, 512 }
  0x46   :  { %p3000_p10 = scmp.ne.s32.totalorder %s3918_s7, %s2999_s17  ;;  %p3003_p11 = scmp.lt.u32.totalorder %s2999_s17, %s3918_s7 }
  0x48   :  { %p3005_p12 = pnand %p3003_p11, %p3000_p10 }
  0x4a   :  { %3008 = shalt.err (!%p3005_p12)
}
  0x4b   :  { %s3009_s1 = scalar_lea.vmem %s3501_s29, 512  ;;  %p3014_p0 = scmp.lt.s32.totalorder %s3501_s29, %s3501_s29 }
  0x4c   :  { %p3010_p13 = scmp.ne.s32.totalorder %s3501_s29, %s3009_s1  ;;  %p3015_p1 = scmp.lt.s32.totalorder %s3009_s1, %s3009_s1 }
  0x4e   :  { %p3016_p2 = por %p3015_p1, %p3014_p0 }
  0x50   :  { %p3017_p3 = pnand %p3016_p2, %p3010_p13 }
  0x52   :  { %3020 = shalt.err (!%p3017_p3)
}
  0x53   :  { %121 = dma.hbm_to_vmem [thread:$0]  %s3918_s7, 512, %s3501_s29, [#allocation15], %s3351_s22, %s3351_s22, %s3352_s23  }
  0x54   :  { %s3355_s20 = smov [#allocation17]   ;;  %s3356_s3 = smov [#allocation20]  }
  0x55   :  { %s138_s21 = sshll.u32 %s3355_s20, 4  ;;  %s157_s27 = sshll.u32 %s3356_s3, 4  ;;  %s139_s21 = int_to_ptr.vmem [resolvable:$true] %s138_s21  ;;  %s3538_s27 = int_to_ptr.vmem [resolvable:$true] %s157_s27 }
  0x56   :  { %s3021_s24 = scalar_lea.hbm %s3920_s9, 16 }
  0x57   :  { %p3022_p4 = scmp.ne.s32.totalorder %s3920_s9, %s3021_s24  ;;  %p3025_p5 = scmp.lt.u32.totalorder %s3021_s24, %s3920_s9 }
  0x59   :  { %p3027_p6 = pnand %p3025_p5, %p3022_p4 }
  0x5b   :  { %3030 = shalt.err (!%p3027_p6)
}
  0x5c   :  { %s3031_s7 = scalar_lea.vmem %s139_s21, 16  ;;  %s3035_s29 = scalar_lea.vmem %s139_s21, 32 }
  0x5d   :  { %p3032_p7 = scmp.ne.s32.totalorder %s139_s21, %s3031_s7  ;;  %p3036_p8 = scmp.lt.s32.totalorder %s139_s21, %s139_s21 }
  0x5e   :  { %p3037_p9 = scmp.lt.s32.totalorder %s3035_s29, %s3031_s7 }
  0x60   :  { %p3038_p10 = por %p3037_p9, %p3036_p8 }
  0x62   :  { %p3039_p11 = pnand %p3038_p10, %p3032_p7 }
  0x64   :  { %3042 = shalt.err (!%p3039_p11)
}
  0x65   :  { %141 = dma.hbm_to_vmem [thread:$0]  %s3920_s9, 16, %s139_s21, [#allocation18]  }
  0x66   :  { %s3043_s20 = scalar_lea.hbm %s3922_s11, 512 }
  0x67   :  { %p3044_p12 = scmp.ne.s32.totalorder %s3922_s11, %s3043_s20  ;;  %p3047_p13 = scmp.lt.u32.totalorder %s3043_s20, %s3922_s11 }
  0x69   :  { %p3049_p0 = pnand %p3047_p13, %p3044_p12 }
  0x6b   :  { %3052 = shalt.err (!%p3049_p0)
}
  0x6c   :  { %s3053_s17 = scalar_lea.vmem %s3538_s27, 512  ;;  %p3058_p2 = scmp.lt.s32.totalorder %s3538_s27, %s3538_s27 }
  0x6d   :  { %p3054_p1 = scmp.ne.s32.totalorder %s3538_s27, %s3053_s17  ;;  %p3059_p3 = scmp.lt.s32.totalorder %s3053_s17, %s3053_s17 }
  0x6f   :  { %p3060_p4 = por %p3059_p3, %p3058_p2 }
  0x71   :  { %p3061_p5 = pnand %p3060_p4, %p3054_p1 }
  0x73   :  { %3064 = shalt.err (!%p3061_p5)
}
  0x74   :  { %163 = dma.hbm_to_vmem [thread:$0]  %s3922_s11, 512, %s3538_s27, [#allocation21], %s3351_s22, %s3351_s22, %s3352_s23  }
  0x75   :  { %s3357_s28 = smov [#allocation23]   ;;  %s3358_s18 = smov [#allocation26]  }
  0x76   :  { %s179_s30 = sshll.u32 %s3357_s28, 4  ;;  %s202_s7 = sshll.u32 %s3358_s18, 4  ;;  %s180_s30 = int_to_ptr.vmem [resolvable:$true] %s179_s30  ;;  %s203_s7 = int_to_ptr.vmem [resolvable:$true] %s202_s7 }
  0x77   :  { %s3065_s1 = scalar_lea.hbm %s3924_s13, 1024 }
  0x78   :  { %p3066_p6 = scmp.ne.s32.totalorder %s3924_s13, %s3065_s1  ;;  %p3069_p7 = scmp.lt.u32.totalorder %s3065_s1, %s3924_s13 }
  0x7a   :  { %p3071_p8 = pnand %p3069_p7, %p3066_p6 }
  0x7c   :  { %3074 = shalt.err (!%p3071_p8)
}
  0x7d   :  { %s3075_s11 = scalar_lea.vmem %s180_s30, 1024  ;;  %p3080_p10 = scmp.lt.s32.totalorder %s180_s30, %s180_s30 }
  0x7e   :  { %p3076_p9 = scmp.ne.s32.totalorder %s180_s30, %s3075_s11  ;;  %p3081_p11 = scmp.lt.s32.totalorder %s3075_s11, %s3075_s11 }
  0x80   :  { %p3082_p12 = por %p3081_p11, %p3080_p10 }
  0x82   :  { %p3083_p13 = pnand %p3082_p12, %p3076_p9 }
  0x84   :  { %3086 = shalt.err (!%p3083_p13)
}
  0x85   :  { %185 = dma.hbm_to_vmem [thread:$0]  %s3924_s13, 1024, %s180_s30, [#allocation24], %s3351_s22, %s3351_s22, %s3352_s23  }
  0x86   :  { %s3087_s17 = scalar_lea.hbm %s3926_s15, 16 }
  0x87   :  { %p3088_p0 = scmp.ne.s32.totalorder %s3926_s15, %s3087_s17  ;;  %p3091_p1 = scmp.lt.u32.totalorder %s3087_s17, %s3926_s15 }
  0x89   :  { %p3093_p2 = pnand %p3091_p1, %p3088_p0 }
  0x8b   :  { %3096 = shalt.err (!%p3093_p2)
}
  0x8c   :  { %s3097_s29 = scalar_lea.vmem %s203_s7, 16  ;;  %s3101_s19 = scalar_lea.vmem %s203_s7, 32 }
  0x8d   :  { %p3098_p3 = scmp.ne.s32.totalorder %s203_s7, %s3097_s29  ;;  %p3102_p4 = scmp.lt.s32.totalorder %s203_s7, %s203_s7 }
  0x8e   :  { %p3103_p5 = scmp.lt.s32.totalorder %s3101_s19, %s3097_s29 }
  0x90   :  { %p3104_p6 = por %p3103_p5, %p3102_p4 }
  0x92   :  { %p3105_p7 = pnand %p3104_p6, %p3098_p3 }
  0x94   :  { %3108 = shalt.err (!%p3105_p7)
}
  0x95   :  { %205 = dma.hbm_to_vmem [thread:$0]  %s3926_s15, 16, %s203_s7, [#allocation27]  }
  0x96   :  { %s3359_s1 = smov [#allocation2]   ;;  %s3360_s26 = smov [#allocation7]  }
  0x97   :  { %s37_s5 = sshll.u32 %s3359_s1, 4  ;;  %s62_s20 = sshll.u32 %s3360_s26, 4  ;;  %s38_s5 = int_to_ptr.vmem [resolvable:$true] %s37_s5  ;;  %s63_s20 = int_to_ptr.vmem [resolvable:$true] %s62_s20 }
  0x98   :  { %s3936_s27 = sld [smem:[#allocation40_spill]] }
  0x9e   :  { %s3109_s25 = scalar_lea.hbm %s3936_s27, 256 }
  0x9f   :  { %p3110_p8 = scmp.ne.s32.totalorder %s3936_s27, %s3109_s25  ;;  %p3113_p9 = scmp.lt.u32.totalorder %s3109_s25, %s3936_s27 }
  0xa1   :  { %p3115_p10 = pnand %p3113_p9, %p3110_p8 }
  0xa3   :  { %3118 = shalt.err (!%p3115_p10)
}
  0xa4   :  { %s3119_s15 = scalar_lea.vmem %s38_s5, 256  ;;  %p3124_p12 = scmp.lt.s32.totalorder %s38_s5, %s38_s5 }
  0xa5   :  { %p3120_p11 = scmp.ne.s32.totalorder %s38_s5, %s3119_s15  ;;  %p3125_p13 = scmp.lt.s32.totalorder %s3119_s15, %s3119_s15 }
  0xa7   :  { %p3126_p0 = por %p3125_p13, %p3124_p12 }
  0xa9   :  { %p3127_p1 = pnand %p3126_p0, %p3120_p11 }
  0xab   :  { %3130 = shalt.err (!%p3127_p1)
}
  0xac   :  { %43 = dma.hbm_to_vmem [thread:$0]  %s3936_s27, 256, %s38_s5, [#allocation3], %s3351_s22, %s3351_s22, %s3352_s23  }
  0xad   :  { %s3131_s29 = scalar_lea.hbm %s3913_s2, 16 }
  0xae   :  { %p3132_p2 = scmp.ne.s32.totalorder %s3913_s2, %s3131_s29  ;;  %p3135_p3 = scmp.lt.u32.totalorder %s3131_s29, %s3913_s2 }
  0xb0   :  { %p3137_p4 = pnand %p3135_p3, %p3132_p2 }
  0xb2   :  { %3140 = shalt.err (!%p3137_p4)
}
  0xb3   :  { %s3141_s26 = scalar_lea.vmem %s63_s20, 16  ;;  %s3145_s3 = scalar_lea.vmem %s63_s20, 32 }
  0xb4   :  { %p3142_p5 = scmp.ne.s32.totalorder %s63_s20, %s3141_s26  ;;  %p3146_p6 = scmp.lt.s32.totalorder %s63_s20, %s63_s20 }
  0xb5   :  { %p3147_p7 = scmp.lt.s32.totalorder %s3145_s3, %s3141_s26 }
  0xb7   :  { %p3148_p8 = por %p3147_p7, %p3146_p6 }
  0xb9   :  { %p3149_p9 = pnand %p3148_p8, %p3142_p5 }
  0xbb   :  { %3152 = shalt.err (!%p3149_p9)
}
  0xbc   :  { %65 = dma.hbm_to_vmem [thread:$0]  %s3913_s2, 16, %s63_s20, [#allocation6]  }
  0xbd   :  { %s3361_s27 = smov [#allocation10]   ;;  %s3362_s0 = smov [#allocation13]  }
  0xbe   :  { %s84_s25 = sshll.u32 %s3361_s27, 4  ;;  %s106_s24 = sshll.u32 %s3362_s0, 4  ;;  %s85_s25 = int_to_ptr.vmem [resolvable:$true] %s84_s25  ;;  %s107_s24 = int_to_ptr.vmem [resolvable:$true] %s106_s24 }
  0xbf   :  { %s3153_s15 = scalar_lea.hbm %s3915_s4, 16 }
  0xc0   :  { %p3154_p10 = scmp.ne.s32.totalorder %s3915_s4, %s3153_s15  ;;  %p3157_p11 = scmp.lt.u32.totalorder %s3153_s15, %s3915_s4 }
  0xc2   :  { %p3159_p12 = pnand %p3157_p11, %p3154_p10 }
  0xc4   :  { %3162 = shalt.err (!%p3159_p12)
}
  0xc5   :  { %s3163_s2 = scalar_lea.vmem %s85_s25, 16  ;;  %s3167_s20 = scalar_lea.vmem %s85_s25, 32 }
  0xc6   :  { %p3164_p13 = scmp.ne.s32.totalorder %s85_s25, %s3163_s2  ;;  %p3168_p0 = scmp.lt.s32.totalorder %s85_s25, %s85_s25 }
  0xc7   :  { %p3169_p1 = scmp.lt.s32.totalorder %s3167_s20, %s3163_s2 }
  0xc9   :  { %p3170_p2 = por %p3169_p1, %p3168_p0 }
  0xcb   :  { %p3171_p3 = pnand %p3170_p2, %p3164_p13 }
  0xcd   :  { %3174 = shalt.err (!%p3171_p3)
}
  0xce   :  { %87 = dma.hbm_to_vmem [thread:$0]  %s3915_s4, 16, %s85_s25, [#allocation9]  }
  0xcf   :  { %s3175_s1 = scalar_lea.hbm %s3917_s6, 16 }
  0xd0   :  { %p3176_p4 = scmp.ne.s32.totalorder %s3917_s6, %s3175_s1  ;;  %p3179_p5 = scmp.lt.u32.totalorder %s3175_s1, %s3917_s6 }
  0xd2   :  { %p3181_p6 = pnand %p3179_p5, %p3176_p4 }
  0xd4   :  { %3184 = shalt.err (!%p3181_p6)
}
  0xd5   :  { %s3185_s27 = scalar_lea.vmem %s107_s24, 16  ;;  %s3189_s0 = scalar_lea.vmem %s107_s24, 32 }
  0xd6   :  { %p3186_p7 = scmp.ne.s32.totalorder %s107_s24, %s3185_s27  ;;  %p3190_p8 = scmp.lt.s32.totalorder %s107_s24, %s107_s24 }
  0xd7   :  { %p3191_p9 = scmp.lt.s32.totalorder %s3189_s0, %s3185_s27 }
  0xd9   :  { %p3192_p10 = por %p3191_p9, %p3190_p8 }
  0xdb   :  { %p3193_p11 = pnand %p3192_p10, %p3186_p7 }
  0xdd   :  { %3196 = shalt.err (!%p3193_p11)
}
  0xde   :  { %109 = dma.hbm_to_vmem [thread:$0]  %s3917_s6, 16, %s107_s24, [#allocation12]  }
  0xdf   :  { %s3363_s17 = smov [#allocation16]   ;;  %s3364_s15 = smov [#allocation19]  }
  0xe0   :  { %s128_s9 = sshll.u32 %s3363_s17, 4  ;;  %s148_s7 = sshll.u32 %s3364_s15, 4  ;;  %s129_s9 = int_to_ptr.vmem [resolvable:$true] %s128_s9  ;;  %s149_s7 = int_to_ptr.vmem [resolvable:$true] %s148_s7 }
  0xe1   :  { %s3197_s18 = scalar_lea.hbm %s3919_s8, 16 }
  0xe2   :  { %p3198_p12 = scmp.ne.s32.totalorder %s3919_s8, %s3197_s18  ;;  %p3201_p13 = scmp.lt.u32.totalorder %s3197_s18, %s3919_s8 }
  0xe4   :  { %p3203_p0 = pnand %p3201_p13, %p3198_p12 }
  0xe6   :  { %3206 = shalt.err (!%p3203_p0)
}
  0xe7   :  { %s3207_s6 = scalar_lea.vmem %s129_s9, 16  ;;  %s3211_s24 = scalar_lea.vmem %s129_s9, 32 }
  0xe8   :  { %p3208_p1 = scmp.ne.s32.totalorder %s129_s9, %s3207_s6  ;;  %p3212_p2 = scmp.lt.s32.totalorder %s129_s9, %s129_s9 }
  0xe9   :  { %p3213_p3 = scmp.lt.s32.totalorder %s3211_s24, %s3207_s6 }
  0xeb   :  { %p3214_p4 = por %p3213_p3, %p3212_p2 }
  0xed   :  { %p3215_p5 = pnand %p3214_p4, %p3208_p1 }
  0xef   :  { %3218 = shalt.err (!%p3215_p5)
}
  0xf0   :  { %131 = dma.hbm_to_vmem [thread:$0]  %s3919_s8, 16, %s129_s9, [#allocation15]  }
  0xf1   :  { %s3219_s3 = scalar_lea.hbm %s3921_s10, 16 }
  0xf2   :  { %p3220_p6 = scmp.ne.s32.totalorder %s3921_s10, %s3219_s3  ;;  %p3223_p7 = scmp.lt.u32.totalorder %s3219_s3, %s3921_s10 }
  0xf4   :  { %p3225_p8 = pnand %p3223_p7, %p3220_p6 }
  0xf6   :  { %3228 = shalt.err (!%p3225_p8)
}
  0xf7   :  { %s3229_s4 = scalar_lea.vmem %s149_s7, 16  ;;  %s3233_s25 = scalar_lea.vmem %s149_s7, 32 }
  0xf8   :  { %p3230_p9 = scmp.ne.s32.totalorder %s149_s7, %s3229_s4  ;;  %p3234_p10 = scmp.lt.s32.totalorder %s149_s7, %s149_s7 }
  0xf9   :  { %p3235_p11 = scmp.lt.s32.totalorder %s3233_s25, %s3229_s4 }
  0xfb   :  { %p3236_p12 = por %p3235_p11, %p3234_p10 }
  0xfd   :  { %p3237_p13 = pnand %p3236_p12, %p3230_p9 }
  0xff   :  { %3240 = shalt.err (!%p3237_p13)
}
 0x100   :  { %151 = dma.hbm_to_vmem [thread:$0]  %s3921_s10, 16, %s149_s7, [#allocation18]  }
 0x101   :  { %s3365_s9 = smov [#allocation22]   ;;  %s3366_s21 = smov [#allocation25]  }
 0x102   :  { %s170_s15 = sshll.u32 %s3365_s9, 4  ;;  %s192_s28 = sshll.u32 %s3366_s21, 4  ;;  %s171_s15 = int_to_ptr.vmem [resolvable:$true] %s170_s15  ;;  %s193_s28 = int_to_ptr.vmem [resolvable:$true] %s192_s28 }
 0x103   :  { %s3241_s20 = scalar_lea.hbm %s3923_s12, 16 }
 0x104   :  { %p3242_p0 = scmp.ne.s32.totalorder %s3923_s12, %s3241_s20  ;;  %p3245_p1 = scmp.lt.u32.totalorder %s3241_s20, %s3923_s12 }
 0x106   :  { %p3247_p2 = pnand %p3245_p1, %p3242_p0 }
 0x108   :  { %3250 = shalt.err (!%p3247_p2)
}
 0x109   :  { %s3251_s10 = scalar_lea.vmem %s171_s15, 16  ;;  %s3255_s7 = scalar_lea.vmem %s171_s15, 32 }
 0x10a   :  { %p3252_p3 = scmp.ne.s32.totalorder %s171_s15, %s3251_s10  ;;  %p3256_p4 = scmp.lt.s32.totalorder %s171_s15, %s171_s15 }
 0x10b   :  { %p3257_p5 = scmp.lt.s32.totalorder %s3255_s7, %s3251_s10 }
 0x10d   :  { %p3258_p6 = por %p3257_p5, %p3256_p4 }
 0x10f   :  { %p3259_p7 = pnand %p3258_p6, %p3252_p3 }
 0x111   :  { %3262 = shalt.err (!%p3259_p7)
}
 0x112   :  { %173 = dma.hbm_to_vmem [thread:$0]  %s3923_s12, 16, %s171_s15, [#allocation21]  }
 0x113   :  { %s3263_s3 = scalar_lea.hbm %s3925_s14, 16 }
 0x114   :  { %p3264_p8 = scmp.ne.s32.totalorder %s3925_s14, %s3263_s3  ;;  %p3267_p9 = scmp.lt.u32.totalorder %s3263_s3, %s3925_s14 }
 0x116   :  { %p3269_p10 = pnand %p3267_p9, %p3264_p8 }
 0x118   :  { %3272 = shalt.err (!%p3269_p10)
}
 0x119   :  { %s3273_s4 = scalar_lea.vmem %s193_s28, 16  ;;  %s3277_s25 = scalar_lea.vmem %s193_s28, 32 }
 0x11a   :  { %p3274_p11 = scmp.ne.s32.totalorder %s193_s28, %s3273_s4  ;;  %p3278_p12 = scmp.lt.s32.totalorder %s193_s28, %s193_s28 }
 0x11b   :  { %p3279_p13 = scmp.lt.s32.totalorder %s3277_s25, %s3273_s4 }
 0x11d   :  { %p3280_p0 = por %p3279_p13, %p3278_p12 }
 0x11f   :  { %p3281_p1 = pnand %p3280_p0, %p3274_p11 }
 0x121   :  { %3284 = shalt.err (!%p3281_p1)
}
 0x122   :  { %195 = dma.hbm_to_vmem [thread:$0]  %s3925_s14, 16, %s193_s28, [#allocation24]  }
 0x123   :  { %s3367_s17 = smov [#allocation28]   ;;  %s3285_s18 = scalar_lea.hbm %s3927_s16, 16 }
 0x124   :  { %s212_s9 = sshll.u32 %s3367_s17, 4  ;;  %p3286_p2 = scmp.ne.s32.totalorder %s3927_s16, %s3285_s18  ;;  %s213_s9 = int_to_ptr.vmem [resolvable:$true] %s212_s9 }
 0x125   :  { %p3289_p3 = scmp.lt.u32.totalorder %s3285_s18, %s3927_s16 }
 0x127   :  { %p3291_p4 = pnand %p3289_p3, %p3286_p2 }
 0x129   :  { %3294 = shalt.err (!%p3291_p4)
}
 0x12a   :  { %s3295_s6 = scalar_lea.vmem %s213_s9, 16  ;;  %s3299_s14 = scalar_lea.vmem %s213_s9, 32 }
 0x12b   :  { %p3296_p5 = scmp.ne.s32.totalorder %s213_s9, %s3295_s6  ;;  %p3300_p6 = scmp.lt.s32.totalorder %s213_s9, %s213_s9 }
 0x12c   :  { %p3301_p7 = scmp.lt.s32.totalorder %s3299_s14, %s3295_s6 }
 0x12e   :  { %p3302_p8 = por %p3301_p7, %p3300_p6 }
 0x130   :  { %p3303_p9 = pnand %p3302_p8, %p3296_p5 }
 0x132   :  { %3306 = shalt.err (!%p3303_p9)
}
 0x133   :  { %215 = dma.hbm_to_vmem [thread:$0]  %s3927_s16, 16, %s213_s9, [#allocation27]  }
 0x134   :  { %3329 = dma.done.wait [#allocation3], 256  }
 0x135   :  { %3330 = vsyncadd [#allocation3], 4294967040 }
 0x136   :  { %3331 = dma.done.wait [#allocation6], 528  }
 0x137   :  { %3332 = vsyncadd [#allocation6], 4294966768 }
 0x138   :  { %3333 = dma.done.wait [#allocation9], 528  }
 0x139   :  { %3334 = vsyncadd [#allocation9], 4294966768 }
 0x13a   :  { %3335 = dma.done.wait [#allocation12], 528  }
 0x13b   :  { %3336 = vsyncadd [#allocation12], 4294966768 }
 0x13c   :  { %3337 = dma.done.wait [#allocation15], 528  }
 0x13d   :  { %3338 = vsyncadd [#allocation15], 4294966768 }
 0x13e   :  { %3339 = dma.done.wait [#allocation18], 32  }
 0x13f   :  { %3340 = vsyncadd [#allocation18], 4294967264 }
 0x140   :  { %3341 = dma.done.wait [#allocation21], 528  }
 0x141   :  { %3342 = vsyncadd [#allocation21], 4294966768 }
 0x142   :  { %3343 = dma.done.wait [#allocation24], 1040  }
 0x143   :  { %3344 = vsyncadd [#allocation24], 4294966256 }
 0x144   :  { %3345 = dma.done.wait [#allocation27], 32  }
 0x145   :  { %3346 = vsyncadd [#allocation27], 4294967264  ;;  %vm295_vm0 = vcmask 261120   ;;  %v269_v0 = vld [vmem:[#allocation5] sm:$0xff]  ;;  %v270_v1 = vld [vmem:[#allocation5 + $0x8] sm:$0xff]  ;;  %v3368_v14 = vmov 0.0  }
 0x146   :  { %v271_v2 = vld [vmem:[#allocation5 + $0x10] sm:$0xff]  ;;  %v2810_v3 = vpack.c.bf16 %v270_v1, %v269_v0  ;;  %v272_v4 = vld [vmem:[#allocation5 + $0x18] sm:$0xff]  ;;  %v273_v7 = vld [vmem:[#allocation8] sm:$0xff]  ;;  %vm3369_vm1 = vmmov 0   ;;  %s3370_s16 = smov 120   ;;  %vm541_vm2 = vcmask 64512  }
 0x147   :  { %v3710_v5 = vld [vmem:[#allocation2] sm:$0xff]  ;;  %v2814_v6 = vpack.c.bf16 %v272_v4, %v271_v2  ;;  %v276_v11 = vld [vmem:[#allocation8 + $0x18] sm:$0xff]  ;;  %v277_v15 = vld [vmem:[#allocation11] sm:$0xff]  ;;  %s3371_s10 = smov 112   ;;  %s3372_s7 = smov 104   ;;  %vm2362_vm3 = vcmask 523264  }
 0x148   :  { %2655 = vmatprep.mubr.msk.f32.mxu1 %vm295_vm0, %v3710_v5  ;;  %v274_v8 = vld [vmem:[#allocation8 + $0x8] sm:$0xff]  ;;  %2677 = vmatprep.mubr.msk.f32.mxu0 %vm295_vm0, %v3710_v5  ;;  %v275_v10 = vld [vmem:[#allocation8 + $0x10] sm:$0xff]  ;;  %v280_v19 = vld [vmem:[#allocation11 + $0x18] sm:$0xff]  ;;  %s3373_s13 = smov [#allocation29]  }
 0x149   :  { %2811 = vmatprep.subr.bf16.mxu1 %v2810_v3  ;;  %v2818_v9 = vpack.c.bf16 %v274_v8, %v273_v7  ;;  %v3716_v12 = vld [vmem:[#allocation2 + $0x8] sm:$0xff]  ;;  %v2822_v13 = vpack.c.bf16 %v276_v11, %v275_v10  ;;  %v278_v16 = vld [vmem:[#allocation11 + $0x8] sm:$0xff]  ;;  %v2517_v21 = vld [vmem:[#allocation7] ss:$0 sm:$0xff]  ;;  %s2497_s30 = sshll.u32 %s3373_s13, 4  ;;  %s2498_s30 = int_to_ptr.vmem [resolvable:$true] %s2497_s30 }
 0x14a   :  { %2813 = vmatpush3.bf16.msra.mxu1 %v2810_v3  ;;  %v279_v17 = vld [vmem:[#allocation11 + $0x10] sm:$0xff]  ;;  %v2826_v18 = vpack.c.bf16 %v278_v16, %v277_v15  ;;  %v2520_v26 = vld [vmem:[#allocation10] ss:$0 sm:$0xff]  ;;  %v2523_v33 = vld [vmem:[#allocation13] ss:$0 sm:$0xff]  ;;  %s3307_s1 = scalar_lea.vmem %s2498_s30, 256  ;;  %p3312_p11 = scmp.lt.s32.totalorder %s2498_s30, %s2498_s30 }
 0x14b   :  { %2815 = vmatprep.subr.bf16.mxu1 %v2814_v6  ;;  %v2830_v20 = vpack.c.bf16 %v280_v19, %v279_v17  ;;  %p3308_p10 = scmp.ne.s32.totalorder %s2498_s30, %s3307_s1  ;;  %p3313_p12 = scmp.lt.s32.totalorder %s3307_s1, %s3307_s1 }
 0x14c   :  { %2827 = vmatprep.subr.bf16.mxu0 %v2826_v18 }
 0x14d   :  { %2829 = vmatpush3.bf16.msra.mxu0 %v2826_v18  ;;  %p3314_p13 = por %p3313_p12, %p3312_p11 }
 0x14e   :  { %2817 = vmatpush3.bf16.msra.mxu1 %v2814_v6  ;;  %2831 = vmatprep.subr.bf16.mxu0 %v2830_v20 }
 0x14f   :  { %2819 = vmatprep.subr.bf16.mxu1 %v2818_v9  ;;  %p3315_p0 = pnand %p3314_p13, %p3308_p10 }
 0x151   :  { %2656 = vmatmul.mubr.msk.f32.vlgmr.msra.gmra.mrb[0].mxu1 %vm295_vm0, %v3716_v12  ;;  %2833 = vmatpush3.bf16.msra.mxu0 %v2830_v20 }
 0x152   :  { %2821 = vmatpush3.bf16.msra.mxu1 %v2818_v9  ;;  %2666 = vmatprep.mubr.msk.f32.mxu1 %vm295_vm0, %v3710_v5 }
 0x153   :  { %2823 = vmatprep.subr.bf16.mxu1 %v2822_v13  ;;  %2690 = vmatprep.subr.mxu0 %v3368_v14 }
 0x154   :  { %2678 = vmatmul.mubr.msk.f32.vlgmr.msra.gmra.mrb[0].mxu0 %vm295_vm0, %v3716_v12 }
 0x155   :  { %2692 = vmatprep.mubr.msk.f32.mxu0 %vm3369_vm1, %v3368_v14 }
 0x156   :  { %2825 = vmatpush3.bf16.msra.mxu1 %v2822_v13 }
 0x157   :  { %2680 = vmatprep.subr.mxu1 %v3368_v14 }
 0x159   :  { %2667 = vmatmul.mubr.msk.f32.vlgmr.msra.gmra.mrb[2].mxu1 %vm295_vm0, %v3716_v12 }
 0x15a   :  { %2682 = vmatprep.mubr.msk.f32.mxu1 %vm3369_vm1, %v3368_v14 }
 0x224   :  { %v2657_v22 = vpop.f32.mrb[0].mxu1 }
 0x225   :  { %v374_v23 = vadd.f32 %v2657_v22, %v2517_v21  ;;  %v368_v24 = vpop.f32.mrb[1].mxu1 }
 0x226   :  { %v369_v28 = vadd.f32 %v2517_v21, %v368_v24  ;;  %v281_v24 = vld [vmem:[#allocation14] sm:$0xff] }
 0x227   :  { %v3732_v25 = vmul.f32 0.35355338, %v374_v23  ;;  %v2679_v34 = vpop.f32.mrb[0].mxu0  ;;  %v282_v23 = vld [vmem:[#allocation14 + $0x8] sm:$0xff] }
 0x228   :  { %v3740_v31 = vmul.f32 0.35355338, %v369_v28  ;;  %v3756_v35 = vadd.f32 %v2679_v34, %v2523_v33  ;;  %v532_v42 = vpop.f32.mrb[1].mxu0 }
 0x229   :  { %940 = vrot.lane.b32.xlu1 %v3732_v25, %s3370_s16  ;;  %v3764_v43 = vadd.f32 %v2523_v33, %v532_v42 }
 0x22b   :  { %2691 = vmatpush3.msra.mxu0 %v3764_v43 }
 0x22c   :  { %v2668_v27 = vpop.f32.mrb[2].mxu1  ;;  %2700 = vmatprep.subr.mxu0 %v3368_v14 }
 0x22d   :  { %v451_v29 = vpop.f32.mrb[3].mxu1  ;;  %v3743_v32 = vadd.f32 %v2668_v27, %v2520_v26 }
 0x22e   :  { %v3736_v30 = vadd.f32 %v2520_v26, %v451_v29 }
 0x230   :  { %2681 = vmatpush3.xpose.msk.msra.mxu1 %vm541_vm2, %v3736_v30 }
 0x231   :  { %2685 = vmatprep.subr.mxu1 %v3368_v14 }
 0x233   :  { %2683 = vmatmul.mubr.msk.f32.vlgmr.msra.gmra.mrb[4].mxu1 %vm541_vm2, %v3740_v31 }
 0x234   :  { %2686 = vmatpush3.xpose.msk.msra.mxu1 %vm541_vm2, %v3743_v32  ;;  %2687 = vmatprep.mubr.msk.f32.mxu1 %vm3369_vm1, %v3368_v14 }
 0x235   :  { %2695 = vmatprep.subr.mxu1 %v3368_v14 }
 0x237   :  { %2688 = vmatmul.mubr.msk.f32.vlgmr.msra.gmra.mrb[6].mxu1 %vm541_vm2, %v3732_v25 }
 0x238   :  { %2697 = vmatprep.mubr.msk.f32.mxu1 %vm3369_vm1, %v3368_v14  ;;  %2696 = vmatpush3.msra.mxu1 %v3756_v35 }
 0x239   :  { %2705 = vmatprep.subr.mxu1 %v3368_v14 }
 0x29b   :  { %v941_v44 = vpop.permute.xlu1 %940 }
 0x306   :  { %v614_v36 = vpop.f32.mrb[4].mxu1 }
 0x307   :  { %v2684_v37 = vpop.f32.mrb[5].mxu1  ;;  %v694_v38 = vsel %vm541_vm2, %v614_v36, -inf }
 0x308   :  { %695 = vmax.xlane.f32.xlu1 %v694_v38 }
 0x30a   :  { %v690_v39 = vpop.f32.mrb[6].mxu1 }
 0x30b   :  { %v2689_v40 = vpop.f32.mrb[7].mxu1  ;;  %v697_v41 = vsel %vm541_vm2, %v690_v39, -inf }
 0x30c   :  { %698 = vmax.xlane.f32.xlu0 %v697_v41 }
 0x319   :  { %1116 = vrot.lane.b32.xlu1 %v3756_v35, %s3370_s16 }
 0x31d   :  { %1358 = vrot.lane.b32.xlu1 %v3736_v30, %s3371_s10 }
 0x321   :  { %1356 = vrot.lane.b32.xlu1 %v3740_v31, %s3371_s10 }
 0x322   :  { %942 = vrot.lane.b32.xlu0 %v3743_v32, %s3370_s16 }
 0x325   :  { %1434 = vrot.lane.b32.xlu1 %v3732_v25, %s3371_s10 }
 0x326   :  { %864 = vrot.lane.b32.xlu0 %v3736_v30, %s3370_s16 }
 0x32a   :  { %862 = vrot.lane.b32.xlu0 %v3740_v31, %s3370_s16 }
 0x395   :  { %v696_v45 = vpop.xlane.xlu1 %695 }
 0x396   :  { %v700_v46 = vsub.f32 %v614_v36, %v696_v45 }
 0x398   :  { %v702_v47 = vmul.f32 1.442695, %v700_v46 }
 0x399   :  { %v699_v48 = vpop.xlane.xlu0 %698  ;;  %v1117_v56 = vpop.permute.xlu1 %1116 }
 0x39a   :  { %2889 = vpow2.f32 %v702_v47  ;;  %v701_v49 = vsub.f32 %v690_v39, %v699_v48 }
 0x39c   :  { %v704_v50 = vmul.f32 1.442695, %v701_v49 }
 0x39d   :  { %v943_v51 = vpop.permute.xlu0 %942  ;;  %v1359_v6 = vpop.permute.xlu1 %1358 }
 0x39e   :  { %2891 = vpow2.f32 %v704_v50 }
 0x3a1   :  { %v865_v52 = vpop.permute.xlu0 %864  ;;  %v1357_v7 = vpop.permute.xlu1 %1356 }
 0x3a4   :  { %v2890_v53 = vpop.eup %2889 }
 0x3a5   :  { %2693 = vmatmul.mubr.msk.f32.vlgmr.msra.gmra.mrb[2].mxu0 %vm541_vm2, %v2890_v53  ;;  %v863_v55 = vpop.permute.xlu0 %862  ;;  %v706_v2 = vsel %vm541_vm2, %v2890_v53, 0.0  ;;  %v1435_v8 = vpop.permute.xlu1 %1434 }
 0x3a6   :  { %2701 = vmatpush3.xpose.msk.msra.mxu0 %vm541_vm2, %v865_v52  ;;  %2702 = vmatprep.mubr.msk.f32.mxu0 %vm3369_vm1, %v3368_v14 }
 0x3a7   :  { %2710 = vmatprep.subr.mxu0 %v3368_v14 }
 0x3a8   :  { %v2892_v54 = vpop.eup %2891 }
 0x3a9   :  { %2698 = vmatmul.mubr.msk.f32.vlgmr.msra.gmra.mrb[8].mxu1 %vm541_vm2, %v2892_v54  ;;  %2703 = vmatmul.mubr.msk.f32.vlgmr.msra.gmra.mrb[4].mxu0 %vm541_vm2, %v863_v55  ;;  %v709_v4 = vsel %vm541_vm2, %v2892_v54, 0.0 }
 0x3aa   :  { %2706 = vmatpush3.xpose.msk.msra.mxu1 %vm541_vm2, %v943_v51  ;;  %2707 = vmatprep.mubr.msk.f32.mxu1 %vm3369_vm1, %v3368_v14 }
 0x3ab   :  { %2715 = vmatprep.subr.mxu1 %v3368_v14  ;;  %2712 = vmatprep.mubr.msk.f32.mxu0 %vm3369_vm1, %v3368_v14 }
 0x3ad   :  { %2708 = vmatmul.mubr.msk.f32.vlgmr.msra.gmra.mrb[10].mxu1 %vm541_vm2, %v941_v44 }
 0x3ae   :  { %2716 = vmatpush3.msra.mxu1 %v1117_v56  ;;  %2717 = vmatprep.mubr.msk.f32.mxu1 %vm3369_vm1, %v3368_v14 }
 0x3af   :  { %2730 = vmatprep.subr.mxu1 %v3368_v14 }
 0x478   :  { %v3797_v57 = vpop.f32.mrb[2].mxu0 }
 0x479   :  { %v2694_v58 = vpop.f32.mrb[3].mxu0 }
 0x47c   :  { %v3799_v59 = vpop.f32.mrb[8].mxu1  ;;  %v936_v60 = vpop.f32.mrb[4].mxu0 }
 0x47d   :  { %v2699_v61 = vpop.f32.mrb[9].mxu1  ;;  %v2704_v62 = vpop.f32.mrb[5].mxu0  ;;  %v1018_v63 = vsel %vm541_vm2, %v936_v60, -inf }
 0x47e   :  { %1019 = vmax.xlane.f32.xlu1 %v1018_v63 }
 0x480   :  { %v1014_v0 = vpop.f32.mrb[10].mxu1 }
 0x481   :  { %v2709_v1 = vpop.f32.mrb[11].mxu1  ;;  %v1021_v3 = vsel %vm541_vm2, %v1014_v0, -inf }
 0x482   :  { %707 = vadd.xlane.f32.xlu1 %v706_v2  ;;  %1022 = vmax.xlane.f32.xlu0 %v1021_v3 }
 0x486   :  { %710 = vadd.xlane.f32.xlu1 %v709_v4 }
 0x498   :  { %1436 = vrot.lane.b32.xlu0 %v3743_v32, %s3371_s10 }
 0x49c   :  { %1039 = vrot.lane.b32.xlu0 %v3764_v43, %s3370_s16 }
 0x50b   :  { %v1020_v9 = vpop.xlane.xlu1 %1019 }
 0x50c   :  { %v1024_v10 = vsub.f32 %v936_v60, %v1020_v9 }
 0x50e   :  { %v1026_v11 = vmul.f32 1.442695, %v1024_v10 }
 0x50f   :  { %v1023_v13 = vpop.xlane.xlu0 %1022  ;;  %v708_v26 = vpop.xlane.xlu1 %707 }
 0x510   :  { %2893 = vpow2.f32 %v1026_v11  ;;  %v1025_v15 = vsub.f32 %v1014_v0, %v1023_v13  ;;  %v283_v0 = vld [vmem:[#allocation14 + $0x10] sm:$0xff] }
 0x512   :  { %v1028_v16 = vmul.f32 1.442695, %v1025_v15 }
 0x513   :  { %v1437_v17 = vpop.permute.xlu0 %1436  ;;  %v711_v27 = vpop.xlane.xlu1 %710 }
 0x514   :  { %2895 = vpow2.f32 %v1028_v16 }
 0x517   :  { %v1040_v18 = vpop.permute.xlu0 %1039 }
 0x518   :  { %2711 = vmatpush3.msra.mxu0 %v1040_v18 }
 0x519   :  { %2720 = vmatprep.subr.mxu0 %v282_v23 }
 0x51a   :  { %v2894_v19 = vpop.eup %2893 }
 0x51b   :  { %2713 = vmatmul.mubr.msk.f32.vlgmr.msra.gmra.mrb[6].mxu0 %vm541_vm2, %v2894_v19  ;;  %v1030_v20 = vsel %vm541_vm2, %v2894_v19, 0.0 }
 0x51c   :  { %1031 = vadd.xlane.f32.xlu0 %v1030_v20  ;;  %2721 = vmatpush3.msra.mxu0 %v282_v23 }
 0x51d   :  { %2725 = vmatprep.subr.mxu0 %v281_v24 }
 0x51e   :  { %v2896_v21 = vpop.eup %2895 }
 0x51f   :  { %2718 = vmatmul.mubr.msk.f32.vlgmr.msra.gmra.mrb[12].mxu1 %vm541_vm2, %v2896_v21  ;;  %v1033_v22 = vsel %vm541_vm2, %v2896_v21, 0.0 }
 0x520   :  { %2731 = vmatpush3.xpose.msk.msra.mxu1 %vm541_vm2, %v1359_v6  ;;  %1034 = vadd.xlane.f32.xlu1 %v1033_v22 }
 0x521   :  { %2732 = vmatprep.mubr.msk.f32.mxu1 %vm3369_vm1, %v3368_v14  ;;  %2735 = vmatprep.subr.mxu1 %v3368_v14 }
 0x523   :  { %2733 = vmatmul.mubr.msk.f32.vlgmr.msra.gmra.mrb[14].mxu1 %vm541_vm2, %v1357_v7 }
 0x524   :  { %2736 = vmatpush3.xpose.msk.msra.mxu1 %vm541_vm2, %v1437_v17  ;;  %2737 = vmatprep.mubr.msk.f32.mxu1 %vm3369_vm1, %v3368_v14 }
 0x525   :  { %2745 = vmatprep.subr.mxu1 %v3368_v14 }
 0x527   :  { %2738 = vmatmul.mubr.msk.f32.vlgmr.msra.gmra.mrb[16].mxu1 %vm541_vm2, %v1435_v8 }
 0x528   :  { %2747 = vmatprep.mubr.msk.f32.mxu1 %vm3369_vm1, %v3368_v14 }
 0x532   :  { %1532 = vrot.lane.b32.xlu0 %v3764_v43, %s3371_s10 }
 0x536   :  { %1771 = vrot.lane.b32.xlu0 %v3736_v30, %s3372_s7 }
 0x5a9   :  { %v1032_v28 = vpop.xlane.xlu0 %1031 }
 0x5aa   :  { %2897 = vrcp.f32 %v1032_v28 }
 0x5ab   :  { %2899 = vrcp.f32 %v708_v26 }
 0x5ad   :  { %v1035_v29 = vpop.xlane.xlu1 %1034  ;;  %v1533_v52 = vpop.permute.xlu0 %1532 }
 0x5ae   :  { %2901 = vrcp.f32 %v1035_v29 }
 0x5af   :  { %2903 = vrcp.f32 %v711_v27 }
 0x5b4   :  { %v2898_v33 = vpop.eup %2897 }
 0x5b5   :  { %v2900_v38 = vpop.eup %2899 }
 0x5b6   :  { %v860_v42 = vmul.f32 %v2900_v38, %v3797_v57 }
 0x5b8   :  { %v2902_v30 = vpop.eup %2901 }
 0x5b9   :  { %v2904_v47 = vpop.eup %2903 }
 0x5ba   :  { %v861_v49 = vmul.f32 %v2904_v47, %v3799_v59 }
 0x5ee   :  { %v1111_v34 = vpop.f32.mrb[6].mxu0 }
 0x5ef   :  { %v1192_v36 = vmul.f32 %v2898_v33, %v1111_v34  ;;  %v2714_v37 = vpop.f32.mrb[7].mxu0  ;;  %v284_v34 = vld [vmem:[#allocation14 + $0x18] sm:$0xff] }
 0x5f1   :  { %2722 = vmatprep.mubr.msk.f32.mxu0 %vm541_vm2, %v1192_v36 }
 0x5f2   :  { %v1188_v39 = vpop.f32.mrb[12].mxu1 }
 0x5f3   :  { %v1193_v40 = vmul.f32 %v2902_v30, %v1188_v39  ;;  %v2719_v41 = vpop.f32.mrb[13].mxu1 }
 0x5f5   :  { %2723 = vmatmul.mubr.msk.f32.vlgmr.msra.gmra.mrb[8].mxu0 %vm541_vm2, %v1193_v40 }
 0x5f6   :  { %2727 = vmatprep.mubr.msk.f32.mxu0 %vm541_vm2, %v860_v42  ;;  %v1430_v44 = vpop.f32.mrb[14].mxu1  ;;  %2726 = vmatpush3.msra.mxu0 %v281_v24 }
 0x5f7   :  { %v2734_v45 = vpop.f32.mrb[15].mxu1  ;;  %v1512_v46 = vsel %vm541_vm2, %v1430_v44, -inf  ;;  %2740 = vmatprep.subr.mxu0 %v3368_v14 }
 0x5f8   :  { %1513 = vmax.xlane.f32.xlu1 %v1512_v46  ;;  %v2558_v46 = vld [vmem:[#allocation16] ss:$0 sm:$0xff] }
 0x5fa   :  { %v1508_v48 = vpop.f32.mrb[16].mxu1 }
 0x5fb   :  { %v2739_v50 = vpop.f32.mrb[17].mxu1  ;;  %v1515_v51 = vsel %vm541_vm2, %v1508_v48, -inf }
 0x5fc   :  { %1516 = vmax.xlane.f32.xlu1 %v1515_v51 }
 0x5fd   :  { %2728 = vmatmul.mubr.msk.f32.vlgmr.msra.gmra.mrb[8].mxu0 %vm541_vm2, %v861_v49 }
 0x5fe   :  { %2741 = vmatpush3.msra.mxu0 %v1533_v52  ;;  %2742 = vmatprep.mubr.msk.f32.mxu0 %vm3369_vm1, %v3368_v14 }
 0x5ff   :  { %2750 = vmatprep.subr.mxu0 %v283_v0 }
 0x60d   :  { %1608 = vrot.lane.b32.xlu1 %v3756_v35, %s3371_s10 }
 0x611   :  { %1849 = vrot.lane.b32.xlu1 %v3743_v32, %s3372_s7  ;;  %v1772_v32 = vpop.permute.xlu0 %1771 }
 0x685   :  { %v1514_v53 = vpop.xlane.xlu1 %1513 }
 0x686   :  { %v1518_v54 = vsub.f32 %v1430_v44, %v1514_v53 }
 0x688   :  { %v1520_v55 = vmul.f32 1.442695, %v1518_v54 }
 0x689   :  { %v1517_v56 = vpop.xlane.xlu1 %1516 }
 0x68a   :  { %2905 = vpow2.f32 %v1520_v55  ;;  %v1519_v57 = vsub.f32 %v1508_v48, %v1517_v56 }
 0x68c   :  { %v1522_v58 = vmul.f32 1.442695, %v1519_v57 }
 0x68d   :  { %v1609_v59 = vpop.permute.xlu1 %1608 }
 0x68e   :  { %2907 = vpow2.f32 %v1522_v58  ;;  %2746 = vmatpush3.msra.mxu1 %v1609_v59 }
 0x68f   :  { %2755 = vmatprep.subr.mxu1 %v3368_v14 }
 0x691   :  { %v1850_v1 = vpop.permute.xlu1 %1849 }
 0x694   :  { %v2906_v60 = vpop.eup %2905 }
 0x695   :  { %2743 = vmatmul.mubr.msk.f32.vlgmr.msra.gmra.mrb[10].mxu0 %vm541_vm2, %v2906_v60  ;;  %v1524_v61 = vsel %vm541_vm2, %v2906_v60, 0.0 }
 0x696   :  { %1525 = vadd.xlane.f32.xlu1 %v1524_v61  ;;  %2751 = vmatpush3.msra.mxu0 %v283_v0 }
 0x697   :  { %2760 = vmatprep.subr.mxu0 %v3368_v14 }
 0x698   :  { %v2908_v62 = vpop.eup %2907 }
 0x699   :  { %2748 = vmatmul.mubr.msk.f32.vlgmr.msra.gmra.mrb[18].mxu1 %vm541_vm2, %v2908_v62  ;;  %v1527_v63 = vsel %vm541_vm2, %v2908_v62, 0.0 }
 0x69a   :  { %2756 = vmatpush3.xpose.msk.msra.mxu1 %vm541_vm2, %v1772_v32  ;;  %1528 = vadd.xlane.f32.xlu0 %v1527_v63  ;;  %v2238_v63 = vld [vmem:[#allocation20 + $0x8] sm:$0xff] }
 0x69b   :  { %2757 = vmatprep.mubr.msk.f32.mxu1 %vm3369_vm1, %v3368_v14  ;;  %2765 = vmatprep.subr.mxu1 %v3368_v14 }
 0x6a7   :  { %1769 = vrot.lane.b32.xlu1 %v3740_v31, %s3372_s7 }
 0x6b0   :  { %1847 = vrot.lane.b32.xlu0 %v3732_v25, %s3372_s7 }
 0x723   :  { %v1526_v2 = vpop.xlane.xlu1 %1525 }
 0x724   :  { %2909 = vrcp.f32 %v1526_v2  ;;  %v2240_v2 = vld [vmem:[#allocation20 + $0x18] sm:$0xff] }
 0x727   :  { %v1770_v3 = vpop.permute.xlu1 %1769  ;;  %v1529_v4 = vpop.xlane.xlu0 %1528 }
 0x728   :  { %2758 = vmatmul.mubr.msk.f32.vlgmr.msra.gmra.mrb[20].mxu1 %vm541_vm2, %v1770_v3  ;;  %2911 = vrcp.f32 %v1529_v4 }
 0x729   :  { %2767 = vmatprep.mubr.msk.f32.mxu1 %vm3369_vm1, %v3368_v14 }
 0x72b   :  { %v1848_v13 = vpop.permute.xlu0 %1847 }
 0x72e   :  { %v2910_v31 = vpop.eup %2909 }
 0x732   :  { %v2912_v9 = vpop.eup %2911 }
 0x768   :  { %v1604_v6 = vpop.f32.mrb[10].mxu0 }
 0x769   :  { %v1684_v7 = vmul.f32 %v2910_v31, %v1604_v6  ;;  %v2744_v8 = vpop.f32.mrb[11].mxu0 }
 0x76b   :  { %2752 = vmatprep.mubr.msk.f32.mxu0 %vm541_vm2, %v1684_v7 }
 0x76c   :  { %v1680_v10 = vpop.f32.mrb[18].mxu1 }
 0x76d   :  { %v1685_v25 = vmul.f32 %v2912_v9, %v1680_v10  ;;  %v2749_v11 = vpop.f32.mrb[19].mxu1 }
 0x76f   :  { %2753 = vmatmul.mubr.msk.f32.vlgmr.msra.gmra.mrb[8].mxu0 %vm541_vm2, %v1685_v25  ;;  %v2559_v25 = vld [vmem:[#allocation17] ss:$0 sm:$0xff] }
 0x770   :  { %2761 = vmatpush3.xpose.msk.msra.mxu0 %vm541_vm2, %v1850_v1  ;;  %2762 = vmatprep.mubr.msk.f32.mxu0 %vm3369_vm1, %v3368_v14  ;;  %v2239_v1 = vld [vmem:[#allocation20 + $0x10] sm:$0xff] }
 0x771   :  { %2770 = vmatprep.subr.mxu0 %v3368_v14  ;;  %v2838_v3 = vpack.c.bf16 %v2240_v2, %v2239_v1 }
 0x773   :  { %2763 = vmatmul.mubr.msk.f32.vlgmr.msra.gmra.mrb[12].mxu0 %vm541_vm2, %v1848_v13 }
 0x774   :  { %2772 = vmatprep.mubr.msk.f32.mxu0 %vm3369_vm1, %v3368_v14 }
 0x7fb   :  { %v1843_v15 = vpop.f32.mrb[20].mxu1 }
 0x7fc   :  { %v2759_v16 = vpop.f32.mrb[21].mxu1  ;;  %v1925_v17 = vsel %vm541_vm2, %v1843_v15, -inf }
 0x7fd   :  { %1926 = vmax.xlane.f32.xlu1 %v1925_v17  ;;  %v2560_v16 = vld [vmem:[#allocation19] ss:$0 sm:$0xff] }
 0x80e   :  { %2021 = vrot.lane.b32.xlu1 %v3756_v35, %s3372_s7 }
 0x846   :  { %v1921_v18 = vpop.f32.mrb[12].mxu0 }
 0x847   :  { %v2764_v19 = vpop.f32.mrb[13].mxu0  ;;  %v1928_v20 = vsel %vm541_vm2, %v1921_v18, -inf }
 0x848   :  { %1929 = vmax.xlane.f32.xlu0 %v1928_v20 }
 0x85e   :  { %1945 = vrot.lane.b32.xlu0 %v3764_v43, %s3372_s7 }
 0x88a   :  { %v1927_v21 = vpop.xlane.xlu1 %1926 }
 0x88b   :  { %v1931_v22 = vsub.f32 %v1843_v15, %v1927_v21  ;;  %v2347_v21 = vld [vmem:[#allocation23] sm:$0xff] }
 0x88d   :  { %v1933_v23 = vmul.f32 1.442695, %v1931_v22  ;;  %v2348_v22 = vld [vmem:[#allocation23 + $0x8] sm:$0xff] }
 0x88e   :  { %v2022_v14 = vpop.permute.xlu1 %2021 }
 0x88f   :  { %2913 = vpow2.f32 %v1933_v23  ;;  %2771 = vmatpush3.msra.mxu0 %v2022_v14  ;;  %v2842_v23 = vpack.c.bf16 %v2348_v22, %v2347_v21  ;;  %v2349_v14 = vld [vmem:[#allocation23 + $0x10] sm:$0xff]  ;;  %v2568_v22 = vld [vmem:[#allocation28] ss:$0 sm:$0xff] }
 0x890   :  { %2775 = vmatprep.subr.mxu0 %v284_v34 }
 0x899   :  { %v2914_v24 = vpop.eup %2913 }
 0x89a   :  { %v1937_v26 = vsel %vm541_vm2, %v2914_v24, 0.0 }
 0x89b   :  { %1938 = vadd.xlane.f32.xlu1 %v1937_v26 }
 0x8d5   :  { %v1930_v27 = vpop.xlane.xlu0 %1929 }
 0x8d6   :  { %v1932_v35 = vsub.f32 %v1921_v18, %v1930_v27  ;;  %v2351_v27 = vld [vmem:[#allocation23 + $0x20] sm:$0xff] }
 0x8d8   :  { %v1935_v28 = vmul.f32 1.442695, %v1932_v35  ;;  %v2352_v35 = vld [vmem:[#allocation23 + $0x28] sm:$0xff] }
 0x8d9   :  { %v1946_v29 = vpop.permute.xlu0 %1945 }
 0x8da   :  { %2915 = vpow2.f32 %v1935_v28  ;;  %2766 = vmatpush3.msra.mxu1 %v1946_v29  ;;  %v2850_v28 = vpack.c.bf16 %v2352_v35, %v2351_v27  ;;  %v2353_v29 = vld [vmem:[#allocation23 + $0x30] sm:$0xff] }
 0x8db   :  { %2768 = vmatmul.mubr.msk.f32.vlgmr.msra.gmra.mrb[22].mxu1 %vm541_vm2, %v2914_v24  ;;  %v2350_v24 = vld [vmem:[#allocation23 + $0x18] sm:$0xff] }
 0x8dc   :  { %v2846_v26 = vpack.c.bf16 %v2350_v24, %v2349_v14 }
 0x8e4   :  { %v2916_v33 = vpop.eup %2915 }
 0x8e5   :  { %2773 = vmatmul.mubr.msk.f32.vlgmr.msra.gmra.mrb[14].mxu0 %vm541_vm2, %v2916_v33  ;;  %v1940_v43 = vsel %vm541_vm2, %v2916_v33, 0.0  ;;  %v2354_v33 = vld [vmem:[#allocation23 + $0x38] sm:$0xff] }
 0x8e6   :  { %1941 = vadd.xlane.f32.xlu0 %v1940_v43  ;;  %2776 = vmatpush3.msra.mxu0 %v284_v34  ;;  %v2854_v43 = vpack.c.bf16 %v2354_v33, %v2353_v29  ;;  %v2561_v34 = vld [vmem:[#allocation22] ss:$0 sm:$0xff] }
 0x8e7   :  { %2843 = vmatprep.subr.bf16.mxu0 %v2842_v23 }
 0x928   :  { %v1939_v36 = vpop.xlane.xlu1 %1938 }
 0x929   :  { %2917 = vrcp.f32 %v1939_v36 }
 0x933   :  { %v2918_v38 = vpop.eup %2917 }
 0x973   :  { %v1942_v37 = vpop.xlane.xlu0 %1941 }
 0x974   :  { %2919 = vrcp.f32 %v1942_v37 }
 0x97e   :  { %v2920_v41 = vpop.eup %2919 }
 0x9ae   :  { %v2017_v30 = vpop.f32.mrb[22].mxu1 }
 0x9af   :  { %v2097_v39 = vmul.f32 %v2918_v38, %v2017_v30  ;;  %v2769_v40 = vpop.f32.mrb[23].mxu1 }
 0x9b1   :  { %2777 = vmatprep.mubr.msk.f32.mxu0 %vm541_vm2, %v2097_v39 }
 0x9b8   :  { %v2093_v42 = vpop.f32.mrb[14].mxu0 }
 0x9b9   :  { %v2098_v44 = vmul.f32 %v2920_v41, %v2093_v42  ;;  %v2774_v45 = vpop.f32.mrb[15].mxu0 }
 0x9bb   :  { %2778 = vmatmul.mubr.msk.f32.vlgmr.msra.gmra.mrb[8].mxu0 %vm541_vm2, %v2098_v44 }
 0x9bc   :  { %2845 = vmatpush3.bf16.msra.mxu0 %v2842_v23 }
 0x9bd   :  { %2847 = vmatprep.subr.bf16.mxu0 %v2846_v26 }
 0x9c0   :  { %2849 = vmatpush3.bf16.msra.mxu0 %v2846_v26 }
 0x9c1   :  { %2851 = vmatprep.subr.bf16.mxu0 %v2850_v28 }
 0x9c4   :  { %2853 = vmatpush3.bf16.msra.mxu0 %v2850_v28 }
 0x9c5   :  { %2855 = vmatprep.subr.bf16.mxu0 %v2854_v43 }
 0x9c8   :  { %2857 = vmatpush3.bf16.msra.mxu0 %v2854_v43 }
 0xa8e   :  { %v2779_v47 = vpop.f32.mrb[8].mxu0 }
 0xa8f   :  { %v2189_v48 = vadd.f32 %v2779_v47, %v2558_v46  ;;  %v2171_v49 = vpop.f32.mrb[9].mxu0 }
 0xa90   :  { %v2188_v50 = vadd.f32 %v2558_v46, %v2171_v49 }
 0xa91   :  { %v2191_v51 = vadd.f32 %v2189_v48, %v3716_v12 }
 0xa92   :  { %v2190_v52 = vadd.f32 %v2188_v50, %v3710_v5  ;;  %v2237_v5 = vld [vmem:[#allocation20] sm:$0xff] }
 0xa93   :  { %v2197_v53 = vsel %vm295_vm0, %v2191_v51, 0.0  ;;  %v2834_v0 = vpack.c.bf16 %v2238_v63, %v2237_v5 }
 0xa94   :  { %2198 = vadd.xlane.f32.xlu1 %v2197_v53  ;;  %v2194_v54 = vsel %vm295_vm0, %v2190_v52, 0.0 }
 0xa95   :  { %2195 = vadd.xlane.f32.xlu0 %v2194_v54  ;;  %2835 = vmatprep.subr.bf16.mxu1 %v2834_v0 }
 0xa96   :  { %2837 = vmatpush3.bf16.msra.mxu1 %v2834_v0 }
 0xa97   :  { %2839 = vmatprep.subr.bf16.mxu1 %v2838_v3 }
 0xa9a   :  { %2841 = vmatpush3.bf16.msra.mxu1 %v2838_v3 }
 0xb21   :  { %v2199_v55 = vpop.xlane.xlu1 %2198 }
 0xb22   :  { %v2202_v56 = vmul.f32 0.03125, %v2199_v55  ;;  %v2196_v57 = vpop.xlane.xlu0 %2195 }
 0xb23   :  { %v2201_v58 = vmul.f32 0.03125, %v2196_v57 }
 0xb24   :  { %v2204_v59 = vsub.f32 %v2191_v51, %v2202_v56 }
 0xb25   :  { %v2203_v60 = vsub.f32 %v2190_v52, %v2201_v58  ;;  %v2564_v58 = vld [vmem:[#allocation25] ss:$0 sm:$0xff] }
 0xb26   :  { %v2206_v61 = vmul.f32 %v2204_v59, %v2204_v59 }
 0xb27   :  { %v2205_v62 = vmul.f32 %v2203_v60, %v2203_v60 }
 0xb28   :  { %v2210_v32 = vsel %vm295_vm0, %v2206_v61, 0.0 }
 0xb29   :  { %2211 = vadd.xlane.f32.xlu1 %v2210_v32  ;;  %v2207_v12 = vsel %vm295_vm0, %v2205_v62, 0.0 }
 0xb2a   :  { %2208 = vadd.xlane.f32.xlu0 %v2207_v12 }
 0xbb6   :  { %v2212_v4 = vpop.xlane.xlu1 %2211 }
 0xbb7   :  { %v2214_v31 = vmul.f32 0.03125, %v2212_v4  ;;  %v2209_v6 = vpop.xlane.xlu0 %2208 }
 0xbb8   :  { %v2213_v7 = vmul.f32 0.03125, %v2209_v6 }
 0xbb9   :  { %v2216_v8 = vadd.f32 1e-05, %v2214_v31 }
 0xbba   :  { %v2215_v9 = vadd.f32 1e-05, %v2213_v7 }
 0xbbb   :  { %2921 = vrsqrt.f32 %v2216_v8 }
 0xbbc   :  { %2923 = vrsqrt.f32 %v2215_v9 }
 0xbc5   :  { %v2922_v10 = vpop.eup %2921 }
 0xbc6   :  { %v2924_v11 = vpop.eup %2923  ;;  %v2220_v13 = vmul.f32 %v2922_v10, %v2204_v59 }
 0xbc7   :  { %v2219_v15 = vmul.f32 %v2924_v11, %v2203_v60 }
 0xbc8   :  { %v2228_v17 = vmul.f32 %v2559_v25, %v2220_v13 }
 0xbc9   :  { %v2227_v18 = vmul.f32 %v2559_v25, %v2219_v15 }
 0xbca   :  { %v2236_v20 = vadd.f32 %v2560_v16, %v2228_v17 }
 0xbcb   :  { %v2235_v19 = vadd.f32 %v2560_v16, %v2227_v18  ;;  %v2567_v18 = vld [vmem:[#allocation26] ss:$0 sm:$0xff] }
 0xbcd   :  { %2788 = vmatprep.mubr.msk.f32.mxu1 %vm295_vm0, %v2235_v19 }
 0xbce   :  { %2789 = vmatmul.mubr.msk.f32.vlgmr.msra.gmra.mrb[24].mxu1 %vm295_vm0, %v2236_v20 }
 0xca1   :  { %v2790_v36 = vpop.f32.mrb[24].mxu1 }
 0xca2   :  { %v2326_v37 = vadd.f32 %v2790_v36, %v2561_v34  ;;  %v2320_v38 = vpop.f32.mrb[25].mxu1 }
 0xca3   :  { %v2321_v30 = vadd.f32 %v2561_v34, %v2320_v38 }
 0xca4   :  { %v2332_v39 = vmul.f32 0.044715, %v2326_v37  ;;  %v2330_v55 = vmul.f32 0.5, %v2326_v37 }
 0xca5   :  { %v2331_v40 = vmul.f32 0.044715, %v2321_v30  ;;  %v2329_v53 = vmul.f32 0.5, %v2321_v30 }
 0xca6   :  { %v2334_v41 = vmul.f32 %v2332_v39, %v2326_v37 }
 0xca7   :  { %v2333_v42 = vmul.f32 %v2331_v40, %v2321_v30 }
 0xca8   :  { %v2336_v44 = vmul.f32 %v2334_v41, %v2326_v37 }
 0xca9   :  { %v2335_v45 = vmul.f32 %v2333_v42, %v2321_v30 }
 0xcaa   :  { %v2338_v46 = vadd.f32 %v2336_v44, %v2326_v37 }
 0xcab   :  { %v2337_v47 = vadd.f32 %v2335_v45, %v2321_v30 }
 0xcac   :  { %v2340_v48 = vmul.f32 0.7978846, %v2338_v46 }
 0xcad   :  { %v2339_v49 = vmul.f32 0.7978846, %v2337_v47 }
 0xcae   :  { %2925 = vtanh.f32 %v2340_v48 }
 0xcaf   :  { %2927 = vtanh.f32 %v2339_v49 }
 0xcb8   :  { %v2926_v50 = vpop.eup %2925 }
 0xcb9   :  { %v2928_v51 = vpop.eup %2927  ;;  %v2344_v52 = vadd.f32 1.0, %v2926_v50 }
 0xcba   :  { %v2343_v54 = vadd.f32 1.0, %v2928_v51 }
 0xcbb   :  { %v2346_v57 = vmul.f32 %v2344_v52, %v2330_v55 }
 0xcbc   :  { %v2345_v56 = vmul.f32 %v2343_v54, %v2329_v53 }
 0xcbe   :  { %2807 = vmatprep.mubr.msk.f32.mxu0 %vm2362_vm3, %v2345_v56 }
 0xcbf   :  { %2808 = vmatmul.mubr.msk.f32.vlgmr.msra.gmra.mrb[16].mxu0 %vm2362_vm3, %v2346_v57 }
 0xd92   :  { %v2809_v59 = vpop.f32.mrb[16].mxu0 }
 0xd93   :  { %v2441_v60 = vadd.f32 %v2809_v59, %v2564_v58  ;;  %v2435_v61 = vpop.f32.mrb[17].mxu0 }
 0xd94   :  { %v2436_v62 = vadd.f32 %v2564_v58, %v2435_v61 }
 0xd95   :  { %v2445_v32 = vadd.f32 %v2441_v60, %v2236_v20 }
 0xd96   :  { %v2444_v12 = vadd.f32 %v2436_v62, %v2235_v19 }
 0xd97   :  { %v2451_v5 = vsel %vm295_vm0, %v2445_v32, 0.0 }
 0xd98   :  { %2452 = vadd.xlane.f32.xlu1 %v2451_v5  ;;  %v2448_v63 = vsel %vm295_vm0, %v2444_v12, 0.0 }
 0xd99   :  { %2449 = vadd.xlane.f32.xlu0 %v2448_v63 }
 0xe25   :  { %v2453_v0 = vpop.xlane.xlu1 %2452 }
 0xe26   :  { %v2455_v1 = vmul.f32 0.03125, %v2453_v0  ;;  %v2450_v2 = vpop.xlane.xlu0 %2449 }
 0xe27   :  { %v2454_v3 = vmul.f32 0.03125, %v2450_v2 }
 0xe28   :  { %v2457_v4 = vsub.f32 %v2445_v32, %v2455_v1 }
 0xe29   :  { %v2456_v31 = vsub.f32 %v2444_v12, %v2454_v3 }
 0xe2a   :  { %v2459_v6 = vmul.f32 %v2457_v4, %v2457_v4 }
 0xe2b   :  { %v2458_v7 = vmul.f32 %v2456_v31, %v2456_v31 }
 0xe2c   :  { %v2463_v8 = vsel %vm295_vm0, %v2459_v6, 0.0 }
 0xe2d   :  { %2464 = vadd.xlane.f32.xlu1 %v2463_v8  ;;  %v2460_v9 = vsel %vm295_vm0, %v2458_v7, 0.0 }
 0xe2e   :  { %2461 = vadd.xlane.f32.xlu0 %v2460_v9 }
 0xeba   :  { %v2465_v10 = vpop.xlane.xlu1 %2464 }
 0xebb   :  { %v2467_v25 = vmul.f32 0.03125, %v2465_v10  ;;  %v2462_v11 = vpop.xlane.xlu0 %2461 }
 0xebc   :  { %v2466_v13 = vmul.f32 0.03125, %v2462_v11 }
 0xebd   :  { %v2469_v15 = vadd.f32 1e-05, %v2467_v25 }
 0xebe   :  { %v2468_v16 = vadd.f32 1e-05, %v2466_v13 }
 0xebf   :  { %2929 = vrsqrt.f32 %v2469_v15 }
 0xec0   :  { %2931 = vrsqrt.f32 %v2468_v16 }
 0xec9   :  { %v2930_v17 = vpop.eup %2929 }
 0xeca   :  { %v2932_v19 = vpop.eup %2931  ;;  %v2473_v20 = vmul.f32 %v2930_v17, %v2457_v4 }
 0xecb   :  { %v2472_v21 = vmul.f32 %v2932_v19, %v2456_v31 }
 0xecc   :  { %v2481_v23 = vmul.f32 %v2567_v18, %v2473_v20 }
 0xecd   :  { %v2480_v14 = vmul.f32 %v2567_v18, %v2472_v21 }
 0xece   :  { %v2489_v24 = vadd.f32 %v2568_v22, %v2481_v23 }
 0xecf   :  { %v2488_v26 = vadd.f32 %v2568_v22, %v2480_v14 }
 0xed0   :  { %2491 = vst.msk [vmem:[#allocation29 + $0x8] sm:$0xff] %vm295_vm0, %v2489_v24 }
 0xed1   :  { %2490 = vst.msk [vmem:[#allocation29] sm:$0xff] %vm295_vm0, %v2488_v26 }
 0xed2   :  { %3318 = shalt.err (!%p3315_p0)
}
 0xed3   :  { %s3937_s5 = sld [smem:[#allocation42_spill]] }
 0xed9   :  { %s3319_s11 = scalar_lea.hbm %s3937_s5, 256 }
 0xeda   :  { %p3320_p1 = scmp.ne.s32.totalorder %s3937_s5, %s3319_s11  ;;  %p3323_p2 = scmp.lt.u32.totalorder %s3319_s11, %s3937_s5 }
 0xedc   :  { %p3325_p3 = pnand %p3323_p2, %p3320_p1 }
 0xede   :  { %3328 = shalt.err (!%p3325_p3)
}
 0xedf   :  { %2503 = dma.vmem_to_hbm [thread:$0]  %s2498_s30, 256, %s3937_s5, [#allocation4], %s3351_s22, %s3351_s22, %s3352_s23  }
 0xee0   :  { %3347 = dma.done.wait [#allocation4], 256  }
 0xee1   :  { %3348 = vsyncadd [#allocation4], 4294967040 }
 0xee2   :  { %2507 = vsyncpa [#allocation3], 1 }
 0xee3   :  { %2508 = vsyncpa [#allocation6], 1 }
 0xee4   :  { %2509 = vsyncpa [#allocation9], 1 }
 0xee5   :  { %2510 = vsyncpa [#allocation12], 1 }
 0xee6   :  { %2511 = vsyncpa [#allocation15], 1 }
 0xee7   :  { %2512 = vsyncpa [#allocation18], 1 }
 0xee8   :  { %2513 = vsyncpa [#allocation21], 1 }
 0xee9   :  { %2514 = vsyncpa [#allocation24], 1 }
 0xeea   :  { %2515 = vsyncpa [#allocation27], 1 }
 0xeeb   :  { %2516 = vsyncpa [#allocation4], 1 }

</bundles_post_ra>
